<compile_context>
chip_gen: v7x
topology: tpu7x:2x2x1
jax: 0.10.0
libtpu: 0.0.40
codegen_flags: <defaults>
</compile_context>

<pallas_src>
import functools

import jax
import jax.numpy as jnp
from jax.experimental import pallas as pl
from jax.experimental.pallas import tpu as pltpu


def _compute_dtype(dtype):
    # bf16 stays bf16 (v6e/v7x VPUs do bf16 natively); everything else -> f32.
    if dtype == jnp.float32 or dtype == jnp.bfloat16:
        return dtype
    return jnp.float32


def _mmr_single_block_kernel(x_ref, o_ref, *, margin, n, fix_norm):
    """Whole-matrix fast path: diag, relu terms, reduction, normalization in-kernel."""
    cdt = _compute_dtype(x_ref.dtype)
    x = x_ref[...].astype(cdt)                                   # (n, n)
    zero = jnp.zeros((), cdt)

    rows = jax.lax.broadcasted_iota(jnp.int32, (n, n), 0)
    cols = jax.lax.broadcasted_iota(jnp.int32, (n, n), 1)
    on_diag = rows == cols

    # diag(x) extracted in-kernel (exact: a single nonzero per row / column).
    xd = jnp.where(on_diag, x, zero).astype(jnp.float32)
    d_col = jnp.sum(xd, axis=1, keepdims=True)                   # (n, 1) -> x[i, i]
    d_row = jnp.sum(xd, axis=0, keepdims=True)                   # (1, n) -> x[j, j]

    c_i = (jnp.float32(margin) - d_col).astype(cdt)              # margin - x[i, i]
    c_j = (jnp.float32(margin) - d_row).astype(cdt)              # margin - x[j, j]

    t1 = jnp.maximum(c_i + x, zero)      # relu(margin - x[i,i] + x[i,j])
    t2 = jnp.maximum(c_j + x, zero)      # relu(margin - x[j,j] + x[i,j])
    term = (t1 + t2).astype(jnp.float32)

    if fix_norm:
        term = jnp.where(on_diag, 0.0, term)   # exact PyTorch fix_norm masking
        denom = 2.0 * n * (n - 1)              # n == 1 -> 0/0 -> NaN, like PyTorch
    else:
        denom = 2.0 * n * n

    row_sums = jnp.sum(term, axis=1, keepdims=True)              # (n, 1)
    total = jnp.sum(row_sums, axis=0, keepdims=True)             # (1, 1)
    o_ref[...] = total / jnp.float32(denom)


def _mmr_tiled_kernel(x_ref, d_col_ref, d_row_ref, o_ref, *, margin, n, tm, tn, sub):
    """Accumulate per-row-tile partial sums of the relu terms into o_ref (sub, tn)."""
    i = pl.program_id(0)
    j = pl.program_id(1)

    @pl.when(j == 0)
    def _init():
        o_ref[...] = jnp.zeros_like(o_ref)

    cdt = _compute_dtype(x_ref.dtype)
    x = x_ref[...].astype(cdt)                                   # (tm, tn), native-dtype stream
    zero = jnp.zeros((), cdt)
    c_i = (jnp.float32(margin) - d_col_ref[...]).astype(cdt)     # (tm, 1)
    c_j = (jnp.float32(margin) - d_row_ref[...]).astype(cdt)     # (1, tn)

    t1 = jnp.maximum(c_i + x, zero)
    t2 = jnp.maximum(c_j + x, zero)
    term = (t1 + t2).astype(jnp.float32)                         # f32 accumulation path

    def fold(t):
        # Sublane-tile fold with pure VALU adds into a lane-dense (8, tn) slab;
        # the single cross-lane reduce happens once, in the wrapper epilogue.
        if sub == 8:
            return t.reshape(tm // 8, 8, tn).sum(axis=0)
        return jnp.sum(t, axis=0, keepdims=True)

    row_ragged = (n % tm) != 0          # static Python bools
    col_ragged = (n % tn) != 0

    if not (row_ragged or col_ragged):
        o_ref[...] += fold(term)
        return

    conds = []
    if row_ragged:
        conds.append(i == pl.num_programs(0) - 1)
    if col_ragged:
        conds.append(j == pl.num_programs(1) - 1)
    is_edge = conds[0] if len(conds) == 1 else jnp.logical_or(conds[0], conds[1])

    @pl.when(is_edge)
    def _edge():
        # Only boundary tiles pay for the mask; OOB reads (unspecified data) are
        # dropped via select so they can never poison the sum.
        valid = None
        if row_ragged:
            r = i * tm + jax.lax.broadcasted_iota(jnp.int32, (tm, tn), 0)
            valid = r < n
        if col_ragged:
            c = j * tn + jax.lax.broadcasted_iota(jnp.int32, (tm, tn), 1)
            cv = c < n
            valid = cv if valid is None else jnp.logical_and(valid, cv)
        o_ref[...] += fold(jnp.where(valid, term, 0.0))

    @pl.when(jnp.logical_not(is_edge))
    def _interior():
        o_ref[...] += fold(term)


def max_margin_ranking_loss(x, margin=0.2, fix_norm=True, weight=None, *,
                            block_rows=256, block_cols=2048, single_block_max=512):
    """Pallas TPU forward pass equivalent to EgoVLPv2 MaxMarginRankingLoss."""
    del weight  # unused, exactly like the PyTorch module
    n = x.shape[0]
    assert x.ndim == 2 and x.shape[1] == n, "expected a square similarity matrix"
    assert block_rows % 8 == 0 and block_cols % 128 == 0
    margin = float(margin)

    # ---- Fast path: one grid step, everything (incl. diag + final reduce) in-kernel.
    if n <= single_block_max:
        out = pl.pallas_call(
            functools.partial(_mmr_single_block_kernel,
                              margin=margin, n=n, fix_norm=fix_norm),
            out_shape=jax.ShapeDtypeStruct((1, 1), jnp.float32),
        )(x)
        return out[0, 0]

    # ---- Tiled path: lane-wide reduction tiles, no HBM padding, native-dtype stream.
    tm = block_rows if n >= block_rows else n     # full dim if smaller (legal block)
    tn = block_cols if n >= block_cols else n
    gi = -(-n // tm)
    gj = -(-n // tn)
    sub = 8 if tm % 8 == 0 else 1

    diag = jnp.diagonal(x).astype(jnp.float32)    # tiny: 4n bytes
    d_col = diag.reshape(n, 1)                    # x[i, i] per row
    d_row = diag.reshape(1, n)                    # x[j, j] per column

    partials = pl.pallas_call(
        functools.partial(_mmr_tiled_kernel,
                          margin=margin, n=n, tm=tm, tn=tn, sub=sub),
        out_shape=jax.ShapeDtypeStruct((gi * sub, tn), jnp.float32),
        grid_spec=pltpu.PrefetchScalarGridSpec(
            num_scalar_prefetch=0,
            grid=(gi, gj),
            in_specs=[
                pl.BlockSpec((tm, tn), lambda i, j: (i, j)),   # x, native dtype
                pl.BlockSpec((tm, 1), lambda i, j: (i, 0)),    # diag column x[i, i]
                pl.BlockSpec((1, tn), lambda i, j: (0, j)),    # diag row    x[j, j]
            ],
            out_specs=pl.BlockSpec((sub, tn), lambda i, j: (i, 0)),
        ),
        compiler_params=pltpu.CompilerParams(
            dimension_semantics=("parallel", "arbitrary")),
    )(x, d_col, d_row)

    total = jnp.sum(partials)
    if fix_norm:
        # Every i == j term equals relu(margin) up to one rounding; drop analytically.
        total = total - jnp.float32(2 * n * max(margin, 0.0))
        denom = 2 * n * (n - 1)
    else:
        denom = 2 * n * n
    return total / jnp.float32(denom)


def _reference_loss(x, margin=0.2, fix_norm=True):
    # Pure-JAX mirror of the PyTorch module.
    n = x.shape[0]
    x = x.astype(jnp.float32)
    x1 = jnp.broadcast_to(jnp.diag(x)[:, None], (n, n)).reshape(-1, 1)
    x1 = jnp.concatenate([x1, x1], axis=0)
    x2 = jnp.concatenate([x.reshape(-1, 1), x.T.reshape(-1, 1)], axis=0)
    mm = jax.nn.relu(margin - (x1 - x2))
    if fix_norm:
        keep = jnp.ones((n, n), jnp.float32) - jnp.eye(n, dtype=jnp.float32)
        keep_all = jnp.concatenate(
            [keep.reshape(-1, 1), keep.T.reshape(-1, 1)], axis=0).flatten()
        return jnp.sum(mm.flatten() * keep_all) / jnp.sum(keep_all)
    return mm.mean()


if __name__ == "__main__":
    key = jax.random.PRNGKey(0)

    # Typical EgoVLPv2-sized batch: fast path (single block, in-kernel reduce).
    n = 300
    x = jax.random.normal(key, (n, n), dtype=jnp.float32)
    ref = _reference_loss(x, 0.2, True)
    loss = jax.block_until_ready(max_margin_ranking_loss(x, 0.2, True))
    assert jnp.allclose(loss, ref, atol=1e-5, rtol=1e-4), (loss, ref)

    # fix_norm=False path (fast path).
    loss_nf = jax.block_until_ready(max_margin_ranking_loss(x, 0.2, False))
    ref_nf = _reference_loss(x, 0.2, False)
    assert jnp.allclose(loss_nf, ref_nf, atol=1e-5, rtol=1e-4), (loss_nf, ref_nf)

    # Tiled path forced at small n: 3x3 grid with ragged row AND column edges.
    loss_t = jax.block_until_ready(max_margin_ranking_loss(
        x, 0.2, True, block_rows=128, block_cols=128, single_block_max=0))
    assert jnp.allclose(loss_t, ref, atol=1e-5, rtol=1e-4), (loss_t, ref)

    # Tiled path with default blocks: lane-wide column tile, ragged last row tile.
    n2 = 640
    x2 = jax.random.normal(jax.random.PRNGKey(2), (n2, n2), dtype=jnp.float32)
    ref2 = _reference_loss(x2, 0.2, True)
    loss2 = jax.block_until_ready(max_margin_ranking_loss(x2, 0.2, True))
    assert jnp.allclose(loss2, ref2, atol=1e-5, rtol=1e-4), (loss2, ref2)

    # Native bf16 input: bf16 VPU math, f32 accumulation (fast + tiled paths).
    xb = x.astype(jnp.bfloat16)
    refb = _reference_loss(xb, 0.2, True)
    lossb = jax.block_until_ready(max_margin_ranking_loss(xb, 0.2, True))
    assert jnp.allclose(lossb, refb, atol=1e-3, rtol=1e-3), (lossb, refb)
    lossbt = jax.block_until_ready(max_margin_ranking_loss(
        xb, 0.2, True, block_rows=128, block_cols=128, single_block_max=0))
    assert jnp.allclose(lossbt, refb, atol=1e-3, rtol=1e-3), (lossbt, refb)

    # Tiny batch like the original EgoVLPv2 usage (n == batch size).
    x8 = jax.random.normal(jax.random.PRNGKey(1), (8, 8), dtype=jnp.float32)
    loss8 = jax.block_until_ready(max_margin_ranking_loss(x8, 0.2, True))
    ref8 = _reference_loss(x8, 0.2, True)
    assert jnp.allclose(loss8, ref8, atol=1e-5, rtol=1e-4), (loss8, ref8)

    print("KERNEL_OK")
</pallas_src>

<mosaic_0001>
module attributes {stable_mosaic.version = 11 : i64} {
  func.func @_mmr_single_block_kernel(%arg0: memref<300x300xf32, #tpu.memory_space<vmem>>, %arg1: memref<1x1xf32, #tpu.memory_space<vmem>>) attributes {dimension_semantics = [], scalar_prefetch = 0 : i64, scratch_operands = 0 : i64, tpu.core_type = #tpu.core_type<tc>} {
    %c0 = arith.constant 0 : index
    %c0_0 = arith.constant 0 : index
    %0 = vector.load %arg0[%c0, %c0_0] : memref<300x300xf32, #tpu.memory_space<vmem>>, vector<300x300xf32>
    %1 = tpu.iota {dimensions = array<i32: 0>} : vector<300x300xi32>
    %2 = tpu.iota {dimensions = array<i32: 1>} : vector<300x300xi32>
    %3 = arith.cmpi eq, %1, %2 : vector<300x300xi32>
    %cst = arith.constant 0.000000e+00 : f32
    %4 = vector.broadcast %cst : f32 to vector<300x300xf32>
    %5 = arith.select %3, %0, %4 : vector<300x300xi1>, vector<300x300xf32>
    %cst_1 = arith.constant dense<0.000000e+00> : vector<300xf32>
    %6 = vector.multi_reduction <add>, %5, %cst_1 [1] : vector<300x300xf32> to vector<300xf32>
    %7 = vector.shape_cast %6 : vector<300xf32> to vector<300x1xf32>
    %cst_2 = arith.constant dense<0.000000e+00> : vector<300xf32>
    %8 = vector.multi_reduction <add>, %5, %cst_2 [0] : vector<300x300xf32> to vector<300xf32>
    %9 = vector.shape_cast %8 : vector<300xf32> to vector<1x300xf32>
    %cst_3 = arith.constant 2.000000e-01 : f32
    %10 = vector.broadcast %cst_3 : f32 to vector<300x1xf32>
    %11 = arith.subf %10, %7 : vector<300x1xf32>
    %cst_4 = arith.constant 2.000000e-01 : f32
    %12 = vector.broadcast %cst_4 : f32 to vector<1x300xf32>
    %13 = arith.subf %12, %9 : vector<1x300xf32>
    %14 = vector.broadcast %11 : vector<300x1xf32> to vector<300x300xf32>
    %15 = arith.addf %14, %0 : vector<300x300xf32>
    %cst_5 = arith.constant 0.000000e+00 : f32
    %16 = vector.broadcast %cst_5 : f32 to vector<300x300xf32>
    %17 = arith.maximumf %15, %16 : vector<300x300xf32>
    %18 = vector.broadcast %13 : vector<1x300xf32> to vector<300x300xf32>
    %19 = arith.addf %18, %0 : vector<300x300xf32>
    %cst_6 = arith.constant 0.000000e+00 : f32
    %20 = vector.broadcast %cst_6 : f32 to vector<300x300xf32>
    %21 = arith.maximumf %19, %20 : vector<300x300xf32>
    %22 = arith.addf %17, %21 : vector<300x300xf32>
    %cst_7 = arith.constant 0.000000e+00 : f32
    %23 = vector.broadcast %cst_7 : f32 to vector<300x300xf32>
    %24 = arith.select %3, %23, %22 : vector<300x300xi1>, vector<300x300xf32>
    %cst_8 = arith.constant dense<0.000000e+00> : vector<300xf32>
    %25 = vector.multi_reduction <add>, %24, %cst_8 [1] : vector<300x300xf32> to vector<300xf32>
    %26 = vector.shape_cast %25 : vector<300xf32> to vector<300x1xf32>
    %cst_9 = arith.constant dense<0.000000e+00> : vector<1xf32>
    %27 = vector.multi_reduction <add>, %26, %cst_9 [0] : vector<300x1xf32> to vector<1xf32>
    %28 = vector.shape_cast %27 : vector<1xf32> to vector<1x1xf32>
    %cst_10 = arith.constant 1.794000e+05 : f32
    %29 = vector.broadcast %cst_10 : f32 to vector<1x1xf32>
    %30 = arith.divf %28, %29 : vector<1x1xf32>
    %c0_11 = arith.constant 0 : index
    %c0_12 = arith.constant 0 : index
    %31 = vector.load %arg1[%c0_11, %c0_12] : memref<1x1xf32, #tpu.memory_space<vmem>>, vector<1x1xf32>
    tpu.vector_store %arg1[%c0_11, %c0_12], %30 {strides = array<i32>} : memref<1x1xf32, #tpu.memory_space<vmem>>, vector<1x1xf32>,
    return
  }
}

</mosaic_0001>

<bundles_post_ra>
// kernel: tpu_custom_call.1
= control target key start
LH: loop header
LB: loop body
LE: loop exit
PB: predicated region body
PF: predicated region fallthrough
CT: control target
= control target key end

     0   :  { %6 = vsyncpa [#allocation3], 0  ;;  %s3945_s0 = inlined_call_operand.hbm [shape: f32[300,300], index: 0, kind: input, shape index: {}]   ;;  %s3946_s1 = inlined_call_operand.hbm [shape: f32[1,1], index: 1, kind: output, shape index: {}]  }
   0x1   :  { %7 = vsyncpa [#allocation4], 0  ;;  %s1814_s6 = smov [#allocation2]   ;;  %s1766_s10 = scalar_lea.hbm %s3945_s0, 14592 }
   0x2   :  { %s13_s7 = sshll.u32 %s1814_s6, 4  ;;  %p1767_p0 = scmp.ne.s32.totalorder %s3945_s0, %s1766_s10  ;;  %s14_s7 = int_to_ptr.vmem [resolvable:$true] %s13_s7 }
   0x3   :  { %p1770_p1 = scmp.lt.u32.totalorder %s1766_s10, %s3945_s0 }
   0x5   :  { %p1772_p2 = pnand %p1770_p1, %p1767_p0 }
   0x7   :  { %1775 = shalt.err (!%p1772_p2)
}
   0x8   :  { %s1776_s15 = scalar_lea.vmem %s14_s7, 14592  ;;  %p1781_p4 = scmp.lt.s32.totalorder %s14_s7, %s14_s7 }
   0x9   :  { %p1777_p3 = scmp.ne.s32.totalorder %s14_s7, %s1776_s15  ;;  %p1782_p5 = scmp.lt.s32.totalorder %s1776_s15, %s1776_s15 }
   0xb   :  { %p1783_p6 = por %p1782_p5, %p1781_p4 }
   0xd   :  { %p1784_p7 = pnand %p1783_p6, %p1777_p3 }
   0xf   :  { %1787 = shalt.err (!%p1784_p7)
}
  0x10   :  { %s1815_s16 = smov 384   ;;  %s1816_s17 = smov 24  }
  0x11   :  { %19 = dma.hbm_to_vmem [thread:$0]  %s3945_s0, 14592, %s14_s7, [#allocation3], %s1815_s16, %s1815_s16, %s1816_s17  }
  0x12   :  { %1810 = dma.done.wait [#allocation3], 14592  }
  0x13   :  { %1811 = vsyncadd [#allocation3], 4294952704  ;;  %v137_v0 = vlaneseq  ;;  %v1853_v6 = vld [vmem:[#allocation2] sm:$0xff]  ;;  %v1857_v7 = vld [vmem:[#allocation2 + $0x30] sm:$0xff]  ;;  %s1817_s0 = smov [#allocation5]  }
  0x14   :  { %v1861_v8 = vld [vmem:[#allocation2 + $0x18] sm:$0xff]  ;;  %v1868_v10 = vld [vmem:[#allocation2 + $0x48] sm:$0xff]  ;;  %v1887_v15 = vld [vmem:[#allocation2 + $0x60] sm:$0xff]  ;;  %s1703_s20 = sshll.u32 %s1817_s0, 4  ;;  %s1704_s20 = int_to_ptr.vmem [resolvable:$true] %s1703_s20 }
  0x15   :  { %v1840_v1 = vshrl.u32 %v137_v0, 7  ;;  %v1842_v2 = vand.u32 127, %v137_v0  ;;  %v1898_v18 = vld [vmem:[#allocation2 + $0x78] sm:$0xff]  ;;  %v1909_v23 = vld [vmem:[#allocation2 + $0x90] sm:$0xff]  ;;  %v1923_v27 = vld [vmem:[#allocation2 + $0xa8] sm:$0xff]  ;;  %s1788_s21 = scalar_lea.vmem %s1704_s20, 16  ;;  %p1793_p9 = scmp.lt.s32.totalorder %s1704_s20, %s1704_s20 }
  0x16   :  { %v1934_v32 = vld [vmem:[#allocation2 + $0xc0] sm:$0xff]  ;;  %v1947_v35 = vld [vmem:[#allocation2 + $0xd8] sm:$0xff]  ;;  %v1968_v44 = vld [vmem:[#allocation2 + $0xf0] sm:$0xff]  ;;  %p1789_p8 = scmp.ne.s32.totalorder %s1704_s20, %s1788_s21  ;;  %s1792_s22 = scalar_lea.vmem %s1704_s20, 32 }
  0x17   :  { %v1845_v3 = vadd.s32 16, %v1840_v1  ;;  %v1848_v4 = vadd.s32 8, %v1840_v1  ;;  %v1851_v5 = vadd.s32 24, %v1840_v1  ;;  %vm180_vm0 = vcmp.eq.s32.totalorder %v1840_v1, %v1842_v2  ;;  %v1981_v47 = vld [vmem:[#allocation2 + $0x108] sm:$0xff]  ;;  %v1985_v50 = vld [vmem:[#allocation2 + $0x1a0] sm:$0xff]  ;;  %v2008_v57 = vld [vmem:[#allocation2 + $0x1b8] sm:$0xff]  ;;  %p1794_p10 = scmp.lt.s32.totalorder %s1792_s22, %s1788_s21 }
  0x18   :  { %v1864_v9 = vadd.s32 32, %v1840_v1  ;;  %v1871_v11 = vadd.s32 40, %v1840_v1  ;;  %v294_v12 = vsel %vm180_vm0, %v1853_v6, 0.0  ;;  %v1890_v16 = vadd.s32 48, %v1840_v1  ;;  %v1983_v49 = vld [vmem:[#allocation2 + $0x188] sm:$0xff]  ;;  %v2002_v54 = vld [vmem:[#allocation2 + $0x120] sm:$0xff] }
  0x19   :  { %4145 = vst [vmem:[#allocation8_spill] sm:$0xff] %v1845_v3  ;;  %4146 = vst [vmem:[#allocation9_spill] sm:$0xff] %v1851_v5  ;;  %vm186_vm1 = vcmp.eq.s32.totalorder %v1845_v3, %v1842_v2  ;;  %vm183_vm2 = vcmp.eq.s32.totalorder %v1848_v4, %v1842_v2  ;;  %vm189_vm3 = vcmp.eq.s32.totalorder %v1851_v5, %v1842_v2  ;;  %412 = vadd.xlane.f32.xlu0 %v294_v12  ;;  %v2031_v62 = vld [vmem:[#allocation2 + $0x138] sm:$0xff]  ;;  %v2033_v0 = vld [vmem:[#allocation2 + $0x1d0] sm:$0xff]  ;;  %p1795_p11 = por %p1794_p10, %p1793_p9 }
  0x1a   :  { %4147 = vst [vmem:[#allocation10_spill] sm:$0xff] %v1864_v9  ;;  %4148 = vst [vmem:[#allocation11_spill] sm:$0xff] %v1871_v11  ;;  %v300_v13 = vsel %vm186_vm1, %v1857_v7, 0.0  ;;  %v297_v14 = vsel %vm183_vm2, %v1861_v8, 0.0  ;;  %vm192_vm4 = vcmp.eq.s32.totalorder %v1864_v9, %v1842_v2  ;;  %v303_v17 = vsel %vm189_vm3, %v1868_v10, 0.0 }
  0x1b   :  { %422 = vadd.xlane.f32.xlu1 %v300_v13  ;;  %4149 = vst [vmem:[#allocation12_spill] sm:$0xff] %v1890_v16  ;;  %v1901_v19 = vadd.s32 56, %v1840_v1  ;;  %vm195_vm5 = vcmp.eq.s32.totalorder %v1871_v11, %v1842_v2  ;;  %v603_v20 = vadd.f32 %v297_v14, %v294_v12  ;;  %v306_v21 = vsel %vm192_vm4, %v1887_v15, 0.0  ;;  %v2268_v5 = vld [vmem:[#allocation2 + $0x388] sm:$0xf]  ;;  %p1796_p12 = pnand %p1795_p11, %p1789_p8 }
  0x1c   :  { %v1912_v24 = vadd.s32 64, %v1840_v1  ;;  %v1915_v25 = vadd.s32 72, %v1840_v1  ;;  %vm198_vm6 = vcmp.eq.s32.totalorder %v1890_v16, %v1842_v2  ;;  %v309_v26 = vsel %vm195_vm5, %v1898_v18, 0.0  ;;  %v2235_v16 = vld [vmem:[#allocation2 + $0x358] sm:$0xff] }
  0x1d   :  { %4150 = vst [vmem:[#allocation13_spill] sm:$0xff] %v1901_v19  ;;  %417 = vadd.xlane.f32.xlu0 %v297_v14  ;;  %v604_v22 = vadd.f32 %v603_v20, %v300_v13  ;;  %vm201_vm7 = vcmp.eq.s32.totalorder %v1901_v19, %v1842_v2  ;;  %v1928_v29 = vadd.s32 80, %v1840_v1  ;;  %v312_v30 = vsel %vm198_vm6, %v1909_v23, 0.0  ;;  %v2051_v20 = vld [vmem:[#allocation2 + $0x150] sm:$0xff] }
  0x1e   :  { %4151 = vst [vmem:[#allocation14_spill] sm:$0xff] %v1912_v24  ;;  %4152 = vst [vmem:[#allocation15_spill] sm:$0xff] %v1915_v25  ;;  %v1937_v33 = vadd.s32 88, %v1840_v1  ;;  %vm204_vm8 = vcmp.eq.s32.totalorder %v1912_v24, %v1842_v2  ;;  %vm3947_vm9 = vcmp.eq.s32.totalorder %v1915_v25, %v1842_v2  ;;  %v315_v34 = vsel %vm201_vm7, %v1923_v27, 0.0 }
  0x1f   :  { %427 = vadd.xlane.f32.xlu1 %v303_v17  ;;  %v605_v28 = vadd.f32 %v604_v22, %v303_v17  ;;  %4153 = vst [vmem:[#allocation16_spill] sm:$0xff] %v1928_v29  ;;  %v1950_v37 = vadd.s32 128, %v1840_v1  ;;  %v1953_v38 = vadd.s32 136, %v1840_v1  ;;  %v1956_v39 = vadd.s32 128, %v1842_v2  ;;  %v2053_v22 = vld [vmem:[#allocation2 + $0x1e8] sm:$0xff] }
  0x20   :  { %4154 = vst [vmem:[#allocation17_spill] sm:$0xff] %v1937_v33  ;;  %v1959_v40 = vadd.s32 96, %v1840_v1  ;;  %v318_v41 = vsel %vm204_vm8, %v1934_v32, 0.0  ;;  %v1966_v43 = vadd.s32 144, %v1840_v1  ;;  %v1971_v45 = vadd.s32 104, %v1840_v1 }
  0x21   :  { %432 = vadd.xlane.f32.xlu0 %v306_v21  ;;  %v606_v31 = vadd.f32 %v605_v28, %v306_v21  ;;  %4155 = vst [vmem:[#allocation18_spill] sm:$0xff] %v1950_v37  ;;  %4156 = vst [vmem:[#allocation19_spill] sm:$0xff] %v1953_v38  ;;  %vm210_vm10 = vcmp.eq.s32.totalorder %v1928_v29, %v1842_v2  ;;  %vm3948_vm11 = vcmp.eq.s32.totalorder %v1937_v33, %v1842_v2  ;;  %v2188_v29 = vld [vmem:[#allocation2 + $0x310] sm:$0xff] }
  0x22   :  { %4157 = vst [vmem:[#allocation20_spill] sm:$0xff] %v1956_v39  ;;  %4158 = vst [vmem:[#allocation21_spill] sm:$0xff] %v1959_v40  ;;  %v321_v46 = vsel %vm3947_vm9, %v1947_v35, 0.0  ;;  %v1988_v51 = vadd.s32 152, %v1840_v1  ;;  %vm3949_vm12 = vcmp.eq.s32.totalorder %v1950_v37, %v1956_v39  ;;  %vm3950_vm13 = vcmp.eq.s32.totalorder %v1953_v38, %v1956_v39  ;;  %v2137_v37 = vld [vmem:[#allocation2 + $0x278] sm:$0xff] }
  0x23   :  { %437 = vadd.xlane.f32.xlu1 %v309_v26  ;;  %v607_v36 = vadd.f32 %v606_v31, %v309_v26  ;;  %4159 = vst [vmem:[#allocation22_spill] sm:$0xff] %v1966_v43  ;;  %4160 = vst [vmem:[#allocation23_spill] sm:$0xff] %v1971_v45  ;;  %v1995_v52 = vadd.s32 112, %v1840_v1  ;;  %v1998_v53 = vadd.s32 120, %v1840_v1  ;;  %vm3951_vm14 = vcmp.eq.s32.totalorder %v1959_v40, %v1842_v2 }
  0x24   :  { %4161 = vst [vmem:[#allocation24_spill] sm:$0xff] %v1988_v51  ;;  %v324_v55 = vsel %vm210_vm10, %v1968_v44, 0.0  ;;  %v2011_v58 = vadd.s32 160, %v1840_v1  ;;  %vm3952_vm15 = vcmp.eq.s32.totalorder %v1966_v43, %v1956_v39  ;;  %vm219_vm9 = vcmp.eq.s32.totalorder %v1971_v45, %v1842_v2 }
  0x25   :  { %442 = vadd.xlane.f32.xlu0 %v312_v30  ;;  %v608_v42 = vadd.f32 %v607_v36, %v312_v30  ;;  %4162 = vst [vmem:[#allocation25_spill] sm:$0xff] %v1995_v52  ;;  %4163 = vst [vmem:[#allocation26_spill] sm:$0xff] %v1998_v53  ;;  %v327_v59 = vsel %vm3948_vm11, %v1981_v47, 0.0  ;;  %v343_v60 = vsel %vm3949_vm12, %v1983_v49, 0.0  ;;  %v2029_v61 = vsel %vm3950_vm13, %v1985_v50, 0.0 }
  0x26   :  { %4164 = vst [vmem:[#allocation27_spill] sm:$0xff] %v2011_v58  ;;  %v2036_v12 = vadd.s32 168, %v1840_v1  ;;  %vm3953_vm11 = vcmp.eq.s32.totalorder %v1988_v51, %v1956_v39  ;;  %v662_v13 = vadd.f32 %v2029_v61, %v343_v60  ;;  %vm3980_vm12 = vcmp.eq.s32.totalorder %v1995_v52, %v1842_v2  ;;  %v2169_v52 = vld [vmem:[#allocation2 + $0x2a8] sm:$0xff] }
  0x27   :  { %447 = vadd.xlane.f32.xlu1 %v315_v34  ;;  %v609_v48 = vadd.f32 %v608_v42, %v315_v34  ;;  %v330_v14 = vsel %vm3951_vm14, %v2002_v54, 0.0  ;;  %v349_v17 = vsel %vm3952_vm15, %v2008_v57, 0.0  ;;  %v2056_v26 = vadd.s32 176, %v1840_v1  ;;  %v2070_v34 = vld [vmem:[#allocation2 + $0x168] sm:$0xff] }
  0x28   :  { %4165 = vst [vmem:[#allocation28_spill] sm:$0xff] %v2036_v12  ;;  %vm3955_vm13 = vcmp.eq.s32.totalorder %v2011_v58, %v1956_v39  ;;  %v663_v28 = vadd.f32 %v662_v13, %v349_v17  ;;  %vm3979_vm14 = vcmp.eq.s32.totalorder %v1998_v53, %v1842_v2  ;;  %v333_v30 = vsel %vm219_vm9, %v2031_v62, 0.0 }
  0x29   :  { %452 = vadd.xlane.f32.xlu0 %v318_v41  ;;  %v610_v56 = vadd.f32 %v609_v48, %v318_v41  ;;  %4166 = vst [vmem:[#allocation29_spill] sm:$0xff] %v2056_v26  ;;  %v352_v31 = vsel %vm3953_vm11, %v2033_v0, 0.0  ;;  %v2072_v41 = vld [vmem:[#allocation2 + $0x200] sm:$0xff]  ;;  %v2075_v42 = vadd.s32 184, %v1840_v1  ;;  %vm3959_vm15 = vcmp.eq.s32.totalorder %v2036_v12, %v1956_v39  ;;  %v2113_v12 = vld [vmem:[#allocation2 + $0x248] sm:$0xff] }
  0x2a   :  { %v336_v48 = vsel %vm3980_vm12, %v2051_v20, 0.0  ;;  %vm3962_vm11 = vcmp.eq.s32.totalorder %v2056_v26, %v1956_v39  ;;  %v2105_v58 = vadd.s32 200, %v1840_v1  ;;  %v2126_v26 = vld [vmem:[#allocation2 + $0x260] sm:$0xff]  ;;  %v2167_v53 = vadd.s32 256, %v1842_v2 }
  0x2b   :  { %457 = vadd.xlane.f32.xlu1 %v321_v46  ;;  %v611_v63 = vadd.f32 %v610_v56, %v321_v46  ;;  %4167 = vst [vmem:[#allocation30_spill] sm:$0xff] %v2075_v42  ;;  %v664_v46 = vadd.f32 %v663_v28, %v352_v31  ;;  %v2172_v45 = vadd.s32 240, %v1840_v1  ;;  %v2229_v19 = vadd.s32 248, %v1840_v1 }
  0x2c   :  { %4169 = vst [vmem:[#allocation32_spill] sm:$0xff] %v2105_v58  ;;  %4176 = vst [vmem:[#allocation39_spill] sm:$0xff] %v2167_v53  ;;  %v2238_v11 = vadd.s32 288, %v1840_v1 }
  0x2d   :  { %462 = vadd.xlane.f32.xlu0 %v324_v55  ;;  %v612_v21 = vadd.f32 %v611_v63, %v324_v55  ;;  %v355_v55 = vsel %vm3955_vm13, %v2053_v22, 0.0  ;;  %v2090_v63 = vadd.s32 192, %v1840_v1  ;;  %vm3964_vm13 = vcmp.eq.s32.totalorder %v2075_v42, %v1956_v39  ;;  %v2149_v42 = vld [vmem:[#allocation2 + $0x290] sm:$0xff]  ;;  %4177 = vst [vmem:[#allocation40_spill] sm:$0xff] %v2172_v45  ;;  %4180 = vst [vmem:[#allocation43_spill] sm:$0xff] %v2229_v19 }
  0x2e   :  { %v665_v13 = vadd.f32 %v664_v46, %v355_v55  ;;  %vm3995_vm12 = vcmp.eq.s32.totalorder %v2172_v45, %v1956_v39  ;;  %4181 = vst [vmem:[#allocation44_spill] sm:$0xff] %v2238_v11 }
  0x2f   :  { %467 = vadd.xlane.f32.xlu1 %v327_v59  ;;  %v613_v36 = vadd.f32 %v612_v21, %v327_v59  ;;  %v2087_v59 = vld [vmem:[#allocation2 + $0x218] sm:$0xff]  ;;  %4168 = vst [vmem:[#allocation31_spill] sm:$0xff] %v2090_v63  ;;  %v339_v21 = vsel %vm3979_vm14, %v2070_v34, 0.0 }
  0x30   :  { %v361_v51 = vsel %vm3962_vm11, %v2087_v59, 0.0  ;;  %vm3972_vm11 = vcmp.eq.s32.totalorder %v2105_v58, %v1956_v39  ;;  %v2164_v58 = vadd.s32 264, %v1840_v1 }
  0x31   :  { %472 = vadd.xlane.f32.xlu0 %v330_v14  ;;  %v614_v56 = vadd.f32 %v613_v36, %v330_v14  ;;  %v358_v14 = vsel %vm3959_vm15, %v2072_v41, 0.0  ;;  %v2102_v36 = vld [vmem:[#allocation2 + $0x230] sm:$0xff]  ;;  %vm3966_vm15 = vcmp.eq.s32.totalorder %v2090_v63, %v1956_v39 }
  0x32   :  { %v666_v46 = vadd.f32 %v665_v13, %v358_v14  ;;  %v364_v13 = vsel %vm3964_vm13, %v2102_v36, 0.0  ;;  %4175 = vst [vmem:[#allocation38_spill] sm:$0xff] %v2164_v58  ;;  %vm3994_vm14 = vcmp.eq.s32.totalorder %v2164_v58, %v2167_v53 }
  0x33   :  { %477 = vadd.xlane.f32.xlu1 %v333_v30  ;;  %v615_v28 = vadd.f32 %v614_v56, %v333_v30  ;;  %v2116_v30 = vadd.s32 208, %v1840_v1 }
  0x34   :  { %v667_v56 = vadd.f32 %v666_v46, %v361_v51  ;;  %v367_v46 = vsel %vm3966_vm15, %v2113_v12, 0.0 }
  0x35   :  { %482 = vadd.xlane.f32.xlu0 %v336_v48  ;;  %v616_v43 = vadd.f32 %v615_v28, %v336_v48  ;;  %4170 = vst [vmem:[#allocation33_spill] sm:$0xff] %v2116_v30  ;;  %v2129_v48 = vadd.s32 216, %v1840_v1  ;;  %vm3974_vm13 = vcmp.eq.s32.totalorder %v2116_v30, %v1956_v39  ;;  %v2180_v30 = vld [vmem:[#allocation2 + $0x2c0] sm:$0xff] }
  0x36   :  { %v668_v28 = vadd.f32 %v667_v56, %v364_v13  ;;  %v370_v56 = vsel %vm3972_vm11, %v2126_v26, 0.0 }
  0x37   :  { %487 = vadd.xlane.f32.xlu1 %v339_v21  ;;  %v2124_v38 = vadd.f32 %v616_v43, %v339_v21  ;;  %4171 = vst [vmem:[#allocation34_spill] sm:$0xff] %v2129_v48  ;;  %v2140_v43 = vadd.s32 224, %v1840_v1  ;;  %vm3978_vm15 = vcmp.eq.s32.totalorder %v2129_v48, %v1956_v39 }
  0x38   :  { %v669_v21 = vadd.f32 %v668_v28, %v367_v46  ;;  %v373_v28 = vsel %vm3974_vm13, %v2137_v37, 0.0 }
  0x39   :  { %492 = vadd.xlane.f32.xlu0 %v343_v60  ;;  %4172 = vst [vmem:[#allocation35_spill] sm:$0xff] %v2140_v43  ;;  %v2152_v60 = vadd.s32 232, %v1840_v1  ;;  %vm3985_vm11 = vcmp.eq.s32.totalorder %v2140_v43, %v1956_v39  ;;  %v640_v9 = vrot.slane %v2124_v38, 4 }
  0x3a   :  { %v670_v63 = vadd.f32 %v669_v21, %v370_v56  ;;  %v379_v33 = vsel %vm3985_vm11, %v2169_v52, 0.0  ;;  %vm409_vm11 = vcmask 359424  }
  0x3b   :  { %497 = vadd.xlane.f32.xlu1 %v2029_v61  ;;  %4173 = vst [vmem:[#allocation36_spill] sm:$0xff] %v2152_v60  ;;  %v2161_v61 = vadd.s32 256, %v1840_v1  ;;  %vm268_vm13 = vcmp.eq.s32.totalorder %v2152_v60, %v1956_v39 }
  0x3c   :  { %v671_v21 = vadd.f32 %v670_v63, %v373_v28  ;;  %v2193_v63 = vadd.s32 272, %v1840_v1 }
  0x3d   :  { %502 = vadd.xlane.f32.xlu0 %v349_v17  ;;  %4174 = vst [vmem:[#allocation37_spill] sm:$0xff] %v2161_v61  ;;  %v376_v17 = vsel %vm3978_vm15, %v2149_v42, 0.0  ;;  %vm3986_vm15 = vcmp.eq.s32.totalorder %v2161_v61, %v2167_v53 }
  0x3e   :  { %v672_v40 = vadd.f32 %v671_v21, %v376_v17  ;;  %4178 = vst [vmem:[#allocation41_spill] sm:$0xff] %v2193_v63  ;;  %v2199_v21 = vld [vmem:[#allocation2 + $0x2d8] sm:$0xff]  ;;  %v392_v25 = vsel %vm3986_vm15, %v2188_v29, 0.0  ;;  %vm3997_vm15 = vcmp.eq.s32.totalorder %v2193_v63, %v2167_v53  ;;  %v2254_v63 = vadd.s32 296, %v1840_v1 }
  0x3f   :  { %507 = vadd.xlane.f32.xlu1 %v352_v31  ;;  %v2190_v31 = vld [vmem:[#allocation2 + $0x328] sm:$0xff]  ;;  %v570_v58 = vsel %vm409_vm11, %v392_v25, 0.0  ;;  %v2243_v25 = vld [vmem:[#allocation2 + $0x2f0] sm:$0xff] }
  0x40   :  { %v673_v43 = vadd.f32 %v672_v40, %v379_v33  ;;  %v395_v24 = vsel %vm3994_vm14, %v2190_v31, 0.0  ;;  %v385_v40 = vsel %vm3995_vm12, %v2199_v21, 0.0  ;;  %vm4002_vm12 = vcmp.eq.s32.totalorder %v2229_v19, %v1956_v39  ;;  %4182 = vst [vmem:[#allocation45_spill] sm:$0xff] %v2254_v63 }
  0x41   :  { %512 = vadd.xlane.f32.xlu0 %v355_v55  ;;  %v382_v55 = vsel %vm268_vm13, %v2180_v30, 0.0  ;;  %v575_v60 = vsel %vm409_vm11, %v395_v24, 0.0 }
  0x42   :  { %v674_v48 = vadd.f32 %v673_v43, %v382_v55  ;;  %v2222_v43 = vadd.s32 280, %v1840_v1  ;;  %v721_v45 = vadd.f32 %v575_v60, %v570_v58 }
  0x43   :  { %517 = vadd.xlane.f32.xlu1 %v358_v14  ;;  %v2219_v14 = vld [vmem:[#allocation2 + $0x340] sm:$0xff] }
  0x44   :  { %4179 = vst [vmem:[#allocation42_spill] sm:$0xff] %v2222_v43  ;;  %v675_v61 = vadd.f32 %v674_v48, %v385_v40  ;;  %vm4001_vm14 = vcmp.eq.s32.totalorder %v2222_v43, %v2167_v53 }
  0x45   :  { %522 = vadd.xlane.f32.xlu0 %v361_v51  ;;  %v398_v51 = vsel %vm3997_vm15, %v2219_v14, 0.0  ;;  %vm290_vm15 = vcmp.eq.s32.totalorder %v2238_v11, %v2167_v53 }
  0x46   :  { %v580_v24 = vsel %vm409_vm11, %v398_v51, 0.0 }
  0x47   :  { %527 = vadd.xlane.f32.xlu1 %v364_v13  ;;  %v401_v13 = vsel %vm4001_vm14, %v2235_v16, 0.0  ;;  %v722_v48 = vadd.f32 %v721_v45, %v580_v24  ;;  %vm293_vm14 = vcmp.eq.s32.totalorder %v2254_v63, %v2167_v53 }
  0x48   :  { %v585_v51 = vsel %vm409_vm11, %v401_v13, 0.0 }
  0x49   :  { %532 = vadd.xlane.f32.xlu0 %v367_v46  ;;  %v2251_v46 = vld [vmem:[#allocation2 + $0x370] sm:$0xff] }
  0x4a   :  { %v404_v45 = vsel %vm290_vm15, %v2251_v46, 0.0 }
  0x4b   :  { %537 = vadd.xlane.f32.xlu1 %v370_v56  ;;  %v388_v56 = vsel %vm4002_vm12, %v2243_v25, 0.0  ;;  %vm598_vm12 = vcmask 355328  }
  0x4c   :  { %v676_v43 = vadd.f32 %v675_v61, %v388_v56  ;;  %v407_v61 = vsel %vm293_vm14, %v2268_v5, 0.0 }
  0x4d   :  { %542 = vadd.xlane.f32.xlu0 %v373_v28  ;;  %v723_v28 = vadd.f32 %v722_v48, %v585_v51  ;;  %v641_v48 = vadd.f32 %v640_v9, %v2124_v38 }
  0x4e   :  { %v683_v53 = vrot.slane %v676_v43, 4 }
  0x4f   :  { %547 = vadd.xlane.f32.xlu1 %v376_v17  ;;  %v590_v17 = vsel %vm409_vm11, %v404_v45, 0.0  ;;  %v642_v19 = vrot.slane %v641_v48, 2 }
  0x50   :  { %v724_v13 = vadd.f32 %v723_v28, %v590_v17 }
  0x51   :  { %552 = vadd.xlane.f32.xlu0 %v379_v33  ;;  %v599_v33 = vsel %vm598_vm12, %v407_v61, 0.0  ;;  %v643_v39 = vadd.f32 %v642_v19, %v641_v48 }
  0x52   :  { %v725_v11 = vadd.f32 %v724_v13, %v599_v33  ;;  %v2399_v13 = vld [vmem:[#allocation2 + $0xa0] sm:$0xff] }
  0x53   :  { %557 = vadd.xlane.f32.xlu1 %v382_v55  ;;  %v644_v3 = vrot.slane %v643_v39, 1 }
  0x54   :  { %v726_v55 = vrot.slane %v725_v11, 4 }
  0x55   :  { %562 = vadd.xlane.f32.xlu0 %v385_v40  ;;  %v645_v28 = vadd.f32 %v644_v3, %v643_v39  ;;  %v684_v40 = vadd.f32 %v683_v53, %v676_v43 }
  0x56   :  { %v727_v45 = vadd.f32 %v726_v55, %v725_v11  ;;  %v2428_v55 = vld [vmem:[#allocation2 + $0xe8] sm:$0xff] }
  0x57   :  { %567 = vadd.xlane.f32.xlu1 %v388_v56  ;;  %v2279_v38 = vsub.f32 0.2, %v645_v28  ;;  %v685_v53 = vrot.slane %v684_v40, 2  ;;  %v2363_v28 = vld [vmem:[#allocation2 + $0x10] sm:$0xff] }
  0x58   :  { %v728_v63 = vrot.slane %v727_v45, 2 }
  0x59   :  { %572 = vadd.xlane.f32.xlu0 %v570_v58  ;;  %v2283_v58 = vadd.f32 %v2279_v38, %v1853_v6  ;;  %v2287_v19 = vadd.f32 %v2279_v38, %v1857_v7  ;;  %v2291_v11 = vadd.f32 %v2279_v38, %v1861_v8  ;;  %v2295_v3 = vadd.f32 %v2279_v38, %v1868_v10 }
  0x5a   :  { %v729_v9 = vadd.f32 %v728_v63, %v727_v45  ;;  %v2299_v39 = vadd.f32 %v2279_v38, %v1887_v15  ;;  %v2303_v6 = vadd.f32 %v2279_v38, %v1898_v18  ;;  %v2307_v7 = vadd.f32 %v2279_v38, %v1909_v23  ;;  %v2378_v45 = vld [vmem:[#allocation2 + $0x58] sm:$0xff] }
  0x5b   :  { %577 = vadd.xlane.f32.xlu1 %v575_v60  ;;  %v2313_v10 = vadd.f32 %v2279_v38, %v1923_v27  ;;  %v2317_v15 = vadd.f32 %v2279_v38, %v1934_v32  ;;  %v2322_v43 = vadd.f32 %v2279_v38, %v1947_v35  ;;  %v2326_v23 = vadd.f32 %v2279_v38, %v1968_v44  ;;  %v2412_v35 = vld [vmem:[#allocation2 + $0xd0] sm:$0xff] }
  0x5c   :  { %v730_v56 = vrot.slane %v729_v9, 1  ;;  %4183 = vst [vmem:[#allocation46_spill] sm:$0xff] %v2299_v39  ;;  %4184 = vst [vmem:[#allocation47_spill] sm:$0xff] %v2303_v6  ;;  %v2336_v32 = vadd.f32 %v2279_v38, %v2002_v54  ;;  %v2341_v61 = vadd.f32 %v2279_v38, %v2031_v62  ;;  %v2345_v44 = vadd.f32 %v2279_v38, %v2051_v20  ;;  %v2401_v62 = vld [vmem:[#allocation2 + $0xb8] sm:$0xff]  ;;  %v2688_v6 = vld [vmem:[#allocation2 + $0x1e0] sm:$0xff] }
  0x5d   :  { %582 = vadd.xlane.f32.xlu0 %v580_v24  ;;  %4185 = vst [vmem:[#allocation48_spill] sm:$0xff] %v2307_v7  ;;  %4186 = vst [vmem:[#allocation49_spill] sm:$0xff] %v2313_v10  ;;  %v2330_v24 = vadd.f32 %v2279_v38, %v1981_v47  ;;  %v2672_v10 = vld [vmem:[#allocation2 + $0x1b0] sm:$0xff]  ;;  %v2723_v39 = vadd.f32 %v2279_v38, %v2688_v6 }
  0x5e   :  { %v731_v60 = vadd.f32 %v730_v56, %v729_v9  ;;  %4187 = vst [vmem:[#allocation50_spill] sm:$0xff] %v2317_v15  ;;  %4188 = vst [vmem:[#allocation51_spill] sm:$0xff] %v2322_v43  ;;  %v2365_v9 = vld [vmem:[#allocation2 + $0x28] sm:$0xff] }
  0x5f   :  { %587 = vadd.xlane.f32.xlu1 %v585_v51  ;;  %4189 = vst [vmem:[#allocation52_spill] sm:$0xff] %v2326_v23  ;;  %4190 = vst [vmem:[#allocation53_spill] sm:$0xff] %v2330_v24  ;;  %v2462_v24 = vld [vmem:[#allocation2 + $0x130] sm:$0xff]  ;;  %v2497_v15 = vld [vmem:[#allocation2 + $0x148] sm:$0xff] }
  0x60   :  { %4191 = vst [vmem:[#allocation54_spill] sm:$0xff] %v2336_v32  ;;  %4192 = vst [vmem:[#allocation55_spill] sm:$0xff] %v2341_v61  ;;  %v2347_v47 = vsub.f32 0.2, %v731_v60  ;;  %v2376_v60 = vld [vmem:[#allocation2 + $0x40] sm:$0xff]  ;;  %v2438_v61 = vld [vmem:[#allocation2 + $0x118] sm:$0xff] }
  0x61   :  { %592 = vadd.xlane.f32.xlu0 %v590_v17  ;;  %v686_v17 = vadd.f32 %v685_v53, %v684_v40  ;;  %4193 = vst [vmem:[#allocation56_spill] sm:$0xff] %v2345_v44  ;;  %v2436_v44 = vld [vmem:[#allocation2 + $0x100] sm:$0xff]  ;;  %4205 = vst [vmem:[#allocation68_spill] sm:$0xff] %v2438_v61 }
  0x62   :  { %v2361_v20 = vadd.f32 %v2347_v47, %v2190_v31  ;;  %v2374_v53 = vadd.f32 %v2347_v47, %v2235_v16  ;;  %v2380_v31 = vld [vmem:[#allocation2 + $0x70] sm:$0xff]  ;;  %v2386_v40 = vadd.f32 %v2347_v47, %v2219_v14  ;;  %v2392_v16 = vld [vmem:[#allocation2 + $0x88] sm:$0xff]  ;;  %v2397_v48 = vadd.f32 %v2347_v47, %v2251_v46  ;;  %4204 = vst [vmem:[#allocation67_spill] sm:$0xff] %v2436_v44 }
  0x63   :  { %601 = vadd.xlane.f32.xlu1 %v599_v33  ;;  %v2354_v33 = vadd.f32 %v2279_v38, %v2070_v34  ;;  %v687_v56 = vrot.slane %v686_v17, 1  ;;  %v2370_v34 = vadd.f32 %v2347_v47, %v2188_v29  ;;  %v2390_v29 = vadd.f32 %v2347_v47, %v2268_v5  ;;  %4211 = vst [vmem:[#allocation74_spill] sm:$0xff] %v2462_v24 }
  0x64   :  { %4195 = vst [vmem:[#allocation58_spill] sm:$0xff] %v2361_v20  ;;  %4197 = vst [vmem:[#allocation60_spill] sm:$0xff] %v2374_v53  ;;  %v2405_v14 = vadd.f32 %v2347_v47, %v2363_v28  ;;  %v2409_v5 = vadd.f32 %v2347_v47, %v2365_v9  ;;  %v2416_v46 = vadd.f32 %v2347_v47, %v2376_v60  ;;  %v2457_v53 = vld [vmem:[#allocation2 + $0x198] sm:$0xff] }
  0x65   :  { %4194 = vst [vmem:[#allocation57_spill] sm:$0xff] %v2354_v33  ;;  %4196 = vst [vmem:[#allocation59_spill] sm:$0xff] %v2370_v34  ;;  %v2420_v54 = vadd.f32 %v2347_v47, %v2378_v45  ;;  %v2424_v51 = vadd.f32 %v2347_v47, %v2380_v31  ;;  %v688_v27 = vadd.f32 %v687_v56, %v686_v17 }
  0x66   :  { %4198 = vst [vmem:[#allocation61_spill] sm:$0xff] %v2386_v40  ;;  %4199 = vst [vmem:[#allocation62_spill] sm:$0xff] %v2390_v29  ;;  %v2432_v8 = vadd.f32 %v2347_v47, %v2392_v16  ;;  %v2442_v17 = vadd.f32 %v2347_v47, %v2399_v13  ;;  %v2446_v56 = vadd.f32 %v2347_v47, %v2401_v62  ;;  %v2455_v29 = vld [vmem:[#allocation2 + $0x180] sm:$0xff] }
  0x67   :  { %4200 = vst [vmem:[#allocation63_spill] sm:$0xff] %v2397_v48  ;;  %4201 = vst [vmem:[#allocation64_spill] sm:$0xff] %v2420_v54  ;;  %v2453_v33 = vadd.f32 %v2347_v47, %v2412_v35  ;;  %v2466_v18 = vadd.f32 %v2347_v47, %v2428_v55  ;;  %v2468_v20 = vsub.f32 0.2, %v688_v27  ;;  %v2473_v48 = vadd.f32 %v2347_v47, %v2436_v44  ;;  %v2706_v54 = vld [vmem:[#allocation2 + $0x1c0] sm:$0xff] }
  0x68   :  { %4202 = vst [vmem:[#allocation65_spill] sm:$0xff] %v2424_v51  ;;  %4203 = vst [vmem:[#allocation66_spill] sm:$0xff] %v2432_v8  ;;  %v2477_v40 = vadd.f32 %v2347_v47, %v2438_v61  ;;  %v2483_v23 = vadd.f32 %v2279_v38, %v2455_v29  ;;  %v2487_v27 = vadd.f32 %v2279_v38, %v2457_v53  ;;  %v2674_v61 = vld [vmem:[#allocation2 + $0x1c8] sm:$0xff] }
  0x69   :  { %4206 = vst [vmem:[#allocation69_spill] sm:$0xff] %v2442_v17  ;;  %4207 = vst [vmem:[#allocation70_spill] sm:$0xff] %v2446_v56  ;;  %v2491_v63 = vadd.f32 %v2468_v20, %v1983_v49  ;;  %v2495_v43 = vadd.f32 %v2468_v20, %v1985_v50  ;;  %v2502_v32 = vadd.f32 %v2347_v47, %v2462_v24  ;;  %v2562_v56 = vld [vmem:[#allocation2 + $0x20] sm:$0xff] }
  0x6a   :  { %4208 = vst [vmem:[#allocation71_spill] sm:$0xff] %v2453_v33  ;;  %4209 = vst [vmem:[#allocation72_spill] sm:$0xff] %v2455_v29  ;;  %v2510_v49 = vadd.f32 %v2468_v20, %v2033_v0  ;;  %v2514_v50 = vadd.f32 %v2468_v20, %v2053_v22  ;;  %v2519_v34 = vadd.f32 %v2468_v20, %v2072_v41  ;;  %v2578_v29 = vld [vmem:[#allocation2 + $0x68] sm:$0xff] }
  0x6b   :  { %4210 = vst [vmem:[#allocation73_spill] sm:$0xff] %v2457_v53  ;;  %4212 = vst [vmem:[#allocation75_spill] sm:$0xff] %v2466_v18  ;;  %v2506_v53 = vadd.f32 %v2468_v20, %v2008_v57  ;;  %v2523_v33 = vadd.f32 %v2468_v20, %v2087_v59  ;;  %v2529_v0 = vadd.f32 %v2468_v20, %v2102_v36  ;;  %v2560_v57 = vld [vmem:[#allocation2 + $0x8] sm:$0xff] }
  0x6c   :  { %4213 = vst [vmem:[#allocation76_spill] sm:$0xff] %v2473_v48  ;;  %4214 = vst [vmem:[#allocation77_spill] sm:$0xff] %v2477_v40  ;;  %v2533_v22 = vadd.f32 %v2468_v20, %v2113_v12  ;;  %v2537_v41 = vadd.f32 %v2468_v20, %v2126_v26  ;;  %v2541_v59 = vadd.f32 %v2347_v47, %v2497_v15  ;;  %v2574_v40 = vld [vmem:[#allocation2 + $0x38] sm:$0xff]  ;;  %v2634_v18 = vld [vmem:[#allocation2 + $0x128] sm:$0xff] }
  0x6d   :  { %4215 = vst [vmem:[#allocation78_spill] sm:$0xff] %v2483_v23  ;;  %4216 = vst [vmem:[#allocation79_spill] sm:$0xff] %v2487_v27  ;;  %v2547_v36 = vadd.f32 %v2468_v20, %v2137_v37  ;;  %v2551_v12 = vadd.f32 %v2468_v20, %v2149_v42  ;;  %v2558_v48 = vadd.f32 %v2468_v20, %v2169_v52  ;;  %v2576_v52 = vld [vmem:[#allocation2 + $0x50] sm:$0xff]  ;;  %v2797_v23 = vld [vmem:[#allocation2 + $0x268] sm:$0xff] }
  0x6e   :  { %4217 = vst [vmem:[#allocation80_spill] sm:$0xff] %v2491_v63  ;;  %4218 = vst [vmem:[#allocation81_spill] sm:$0xff] %v2495_v43  ;;  %v2568_v42 = vadd.f32 %v2468_v20, %v2180_v30  ;;  %v2572_v26 = vadd.f32 %v2468_v20, %v2199_v21  ;;  %v2585_v30 = vadd.f32 %v2468_v20, %v2243_v25  ;;  %v2589_v21 = vld [vmem:[#allocation2 + $0x98] sm:$0xff]  ;;  %v2601_v43 = vld [vmem:[#allocation2 + $0xb0] sm:$0xff] }
  0x6f   :  { %4219 = vst [vmem:[#allocation82_spill] sm:$0xff] %v2497_v15  ;;  %4220 = vst [vmem:[#allocation83_spill] sm:$0xff] %v2502_v32  ;;  %v2599_v37 = vadd.f32 %v2468_v20, %v2562_v56  ;;  %v2603_v25 = vld [vmem:[#allocation2 + $0xc8] sm:$0xff]  ;;  %v2632_v63 = vadd.f32 %v2468_v20, %v2589_v21  ;;  %v2639_v17 = vadd.f32 %v2468_v20, %v2601_v43  ;;  %v2663_v15 = vld [vmem:[#allocation2 + $0x170] sm:$0xff] }
  0x70   :  { %4221 = vst [vmem:[#allocation84_spill] sm:$0xff] %v2506_v53  ;;  %4222 = vst [vmem:[#allocation85_spill] sm:$0xff] %v2510_v49  ;;  %v2595_v53 = vadd.f32 %v2468_v20, %v2560_v57  ;;  %v2614_v49 = vadd.f32 %v2468_v20, %v2576_v52  ;;  %v2670_v7 = vadd.f32 %v2468_v20, %v2634_v18  ;;  %v2748_v32 = vld [vmem:[#allocation2 + $0x208] sm:$0xff] }
  0x71   :  { %4223 = vst [vmem:[#allocation86_spill] sm:$0xff] %v2514_v50  ;;  %4224 = vst [vmem:[#allocation87_spill] sm:$0xff] %v2519_v34  ;;  %v2605_v50 = vld [vmem:[#allocation2 + $0xe0] sm:$0xff]  ;;  %v2610_v34 = vadd.f32 %v2468_v20, %v2574_v40 }
  0x72   :  { %4225 = vst [vmem:[#allocation88_spill] sm:$0xff] %v2523_v33  ;;  %4226 = vst [vmem:[#allocation89_spill] sm:$0xff] %v2529_v0  ;;  %v2587_v33 = vld [vmem:[#allocation2 + $0x80] sm:$0xff]  ;;  %v2643_v0 = vadd.f32 %v2468_v20, %v2603_v25 }
  0x73   :  { %4227 = vst [vmem:[#allocation90_spill] sm:$0xff] %v2533_v22  ;;  %4228 = vst [vmem:[#allocation91_spill] sm:$0xff] %v2537_v41  ;;  %v2622_v22 = vld [vmem:[#allocation2 + $0x110] sm:$0xff]  ;;  %v2647_v41 = vadd.f32 %v2468_v20, %v2605_v50 }
  0x74   :  { %4229 = vst [vmem:[#allocation92_spill] sm:$0xff] %v2541_v59  ;;  %4230 = vst [vmem:[#allocation93_spill] sm:$0xff] %v2547_v36  ;;  %v2620_v36 = vld [vmem:[#allocation2 + $0xf8] sm:$0xff]  ;;  %v2661_v8 = vadd.f32 %v2468_v20, %v2622_v22 }
  0x75   :  { %4231 = vst [vmem:[#allocation94_spill] sm:$0xff] %v2551_v12  ;;  %4232 = vst [vmem:[#allocation95_spill] sm:$0xff] %v2558_v48  ;;  %v2618_v12 = vadd.f32 %v2468_v20, %v2578_v29  ;;  %v2628_v48 = vadd.f32 %v2468_v20, %v2587_v33  ;;  %v2776_v59 = vld [vmem:[#allocation2 + $0x238] sm:$0xff] }
  0x76   :  { %4233 = vst [vmem:[#allocation96_spill] sm:$0xff] %v2568_v42  ;;  %4234 = vst [vmem:[#allocation97_spill] sm:$0xff] %v2572_v26  ;;  %v2649_v26 = vld [vmem:[#allocation2 + $0x140] sm:$0xff]  ;;  %v2651_v42 = vld [vmem:[#allocation2 + $0x158] sm:$0xff] }
  0x77   :  { %4235 = vst [vmem:[#allocation98_spill] sm:$0xff] %v2585_v30  ;;  %4236 = vst [vmem:[#allocation99_spill] sm:$0xff] %v2614_v49  ;;  %v2657_v30 = vadd.f32 %v2468_v20, %v2620_v36  ;;  %v2686_v51 = vadd.f32 %v2468_v20, %v2651_v42  ;;  %v135_v49 = vld [vmem:[#allocation2 + $0x380] sm:$0xf] }
  0x78   :  { %4237 = vst [vmem:[#allocation100_spill] sm:$0xff] %v2618_v12  ;;  %4238 = vst [vmem:[#allocation101_spill] sm:$0xff] %v2620_v36  ;;  %v2682_v36 = vld [vmem:[#allocation2 + $0x160] sm:$0xff]  ;;  %v2694_v12 = vadd.f32 %v2468_v20, %v2663_v15 }
  0x79   :  { %4239 = vst [vmem:[#allocation102_spill] sm:$0xff] %v2622_v22  ;;  %4240 = vst [vmem:[#allocation103_spill] sm:$0xff] %v2628_v48  ;;  %v2678_v22 = vadd.f32 %v2468_v20, %v2649_v26  ;;  %v2698_v48 = vld [vmem:[#allocation2 + $0x190] sm:$0xff] }
  0x7a   :  { %4241 = vst [vmem:[#allocation104_spill] sm:$0xff] %v2632_v63  ;;  %4242 = vst [vmem:[#allocation105_spill] sm:$0xff] %v2634_v18  ;;  %v2690_v18 = vld [vmem:[#allocation2 + $0x178] sm:$0xff] }
  0x7b   :  { %4243 = vst [vmem:[#allocation106_spill] sm:$0xff] %v2639_v17  ;;  %4244 = vst [vmem:[#allocation107_spill] sm:$0xff] %v2643_v0  ;;  %v2701_v63 = vld [vmem:[#allocation2 + $0x1f8] sm:$0xff]  ;;  %v2733_v17 = vld [vmem:[#allocation2 + $0x1f0] sm:$0xff]  ;;  %v2742_v24 = vadd.f32 %v2347_v47, %v2690_v18 }
  0x7c   :  { %4245 = vst [vmem:[#allocation108_spill] sm:$0xff] %v2647_v41  ;;  %4246 = vst [vmem:[#allocation109_spill] sm:$0xff] %v2649_v26  ;;  %v2714_v26 = vadd.f32 %v2279_v38, %v2674_v61  ;;  %v2717_v0 = vld [vmem:[#allocation2 + $0x1d8] sm:$0xff]  ;;  %v2737_v44 = vadd.f32 %v2279_v38, %v2701_v63  ;;  %v2758_v41 = vadd.f32 %v2347_v47, %v2706_v54 }
  0x7d   :  { %4247 = vst [vmem:[#allocation110_spill] sm:$0xff] %v2651_v42  ;;  %4248 = vst [vmem:[#allocation111_spill] sm:$0xff] %v2657_v30  ;;  %v2703_v42 = vld [vmem:[#allocation2 + $0x1a8] sm:$0xff]  ;;  %v2729_v30 = vld [vmem:[#allocation2 + $0x210] sm:$0xff] }
  0x7e   :  { %4249 = vst [vmem:[#allocation112_spill] sm:$0xff] %v2661_v8  ;;  %4250 = vst [vmem:[#allocation113_spill] sm:$0xff] %v2663_v15  ;;  %v2710_v15 = vadd.f32 %v2279_v38, %v2672_v10 }
  0x7f   :  { %4251 = vst [vmem:[#allocation114_spill] sm:$0xff] %v2670_v7  ;;  %4252 = vst [vmem:[#allocation115_spill] sm:$0xff] %v2672_v10  ;;  %v2727_v10 = vadd.f32 %v2347_v47, %v2682_v36  ;;  %v2773_v7 = vadd.f32 %v2347_v47, %v2717_v0 }
  0x80   :  { %4253 = vst [vmem:[#allocation116_spill] sm:$0xff] %v2674_v61  ;;  %4254 = vst [vmem:[#allocation117_spill] sm:$0xff] %v2678_v22  ;;  %v2731_v61 = vld [vmem:[#allocation2 + $0x228] sm:$0xff]  ;;  %v2760_v22 = vld [vmem:[#allocation2 + $0x220] sm:$0xff] }
  0x81   :  { %4255 = vst [vmem:[#allocation118_spill] sm:$0xff] %v2682_v36  ;;  %4256 = vst [vmem:[#allocation119_spill] sm:$0xff] %v2686_v51  ;;  %v2808_v8 = vadd.f32 %v2347_v47, %v2760_v22  ;;  %v2818_v36 = vld [vmem:[#allocation2 + $0x280] sm:$0xff] }
  0x82   :  { %4257 = vst [vmem:[#allocation120_spill] sm:$0xff] %v2688_v6  ;;  %4258 = vst [vmem:[#allocation121_spill] sm:$0xff] %v2690_v18  ;;  %v2746_v6 = vadd.f32 %v2347_v47, %v2698_v48  ;;  %v2768_v18 = vadd.f32 %v2279_v38, %v2731_v61 }
  0x83   :  { %4259 = vst [vmem:[#allocation122_spill] sm:$0xff] %v2694_v12  ;;  %4260 = vst [vmem:[#allocation123_spill] sm:$0xff] %v2698_v48  ;;  %v2764_v48 = vadd.f32 %v2279_v38, %v2729_v30 }
  0x84   :  { %4261 = vst [vmem:[#allocation124_spill] sm:$0xff] %v2701_v63  ;;  %4262 = vst [vmem:[#allocation125_spill] sm:$0xff] %v2703_v42  ;;  %v2754_v63 = vadd.f32 %v2347_v47, %v2703_v42  ;;  %v2779_v42 = vld [vmem:[#allocation2 + $0x240] sm:$0xff] }
  0x85   :  { %4263 = vst [vmem:[#allocation126_spill] sm:$0xff] %v2706_v54  ;;  %4264 = vst [vmem:[#allocation127_spill] sm:$0xff] %v2710_v15  ;;  %v2795_v54 = vadd.f32 %v2347_v47, %v2748_v32  ;;  %v2812_v51 = vadd.f32 %v2279_v38, %v2779_v42 }
  0x86   :  { %4265 = vst [vmem:[#allocation128_spill] sm:$0xff] %v2714_v26  ;;  %4266 = vst [vmem:[#allocation129_spill] sm:$0xff] %v2717_v0  ;;  %v2790_v0 = vld [vmem:[#allocation2 + $0x250] sm:$0xff]  ;;  %v2864_v26 = vadd.f32 %v2347_v47, %v2818_v36 }
  0x87   :  { %4267 = vst [vmem:[#allocation130_spill] sm:$0xff] %v2723_v39  ;;  %4268 = vst [vmem:[#allocation131_spill] sm:$0xff] %v2727_v10  ;;  %v2801_v10 = vld [vmem:[#allocation2 + $0x270] sm:$0xff]  ;;  %v2855_v39 = vld [vmem:[#allocation2 + $0x2c8] sm:$0xff] }
  0x88   :  { %4269 = vst [vmem:[#allocation132_spill] sm:$0xff] %v2729_v30  ;;  %4270 = vst [vmem:[#allocation133_spill] sm:$0xff] %v2731_v61  ;;  %v2781_v30 = vld [vmem:[#allocation2 + $0x258] sm:$0xff]  ;;  %v2786_v61 = vadd.f32 %v2347_v47, %v2733_v17  ;;  %v2838_v27 = vadd.f32 %v2279_v38, %v2801_v10 }
  0x89   :  { %4271 = vst [vmem:[#allocation134_spill] sm:$0xff] %v2733_v17  ;;  %4272 = vst [vmem:[#allocation135_spill] sm:$0xff] %v2737_v44  ;;  %v2803_v17 = vld [vmem:[#allocation2 + $0x288] sm:$0xff]  ;;  %v2816_v15 = vadd.f32 %v2279_v38, %v2781_v30  ;;  %v2853_v44 = vld [vmem:[#allocation2 + $0x2b0] sm:$0xff] }
  0x8a   :  { %4273 = vst [vmem:[#allocation136_spill] sm:$0xff] %v2742_v24  ;;  %4274 = vst [vmem:[#allocation137_spill] sm:$0xff] %v2746_v6  ;;  %v2844_v12 = vadd.f32 %v2279_v38, %v2803_v17  ;;  %v2851_v6 = vadd.f32 %v2347_v47, %v2797_v23 }
  0x8b   :  { %4275 = vst [vmem:[#allocation138_spill] sm:$0xff] %v2748_v32  ;;  %4276 = vst [vmem:[#allocation139_spill] sm:$0xff] %v2754_v63  ;;  %v2827_v63 = vld [vmem:[#allocation2 + $0x2a0] sm:$0xff]  ;;  %v134_v32 = vld [vmem:[#allocation2 + $0x378] sm:$0xf] }
  0x8c   :  { %4277 = vst [vmem:[#allocation140_spill] sm:$0xff] %v2758_v41  ;;  %4278 = vst [vmem:[#allocation141_spill] sm:$0xff] %v2760_v22  ;;  %v2823_v41 = vadd.f32 %v2347_v47, %v2776_v59  ;;  %v2874_v22 = vld [vmem:[#allocation2 + $0x2e0] sm:$0xff] }
  0x8d   :  { %4279 = vst [vmem:[#allocation142_spill] sm:$0xff] %v2764_v48  ;;  %4280 = vst [vmem:[#allocation143_spill] sm:$0xff] %v2768_v18  ;;  %v2882_v18 = vld [vmem:[#allocation2 + $0x2f8] sm:$0xff] }
  0x8e   :  { %4281 = vst [vmem:[#allocation144_spill] sm:$0xff] %v2773_v7  ;;  %4282 = vst [vmem:[#allocation145_spill] sm:$0xff] %v2776_v59  ;;  %v2840_v7 = vld [vmem:[#allocation2 + $0x298] sm:$0xff]  ;;  %v2859_v59 = vld [vmem:[#allocation2 + $0x2e8] sm:$0xff] }
  0x8f   :  { %4283 = vst [vmem:[#allocation146_spill] sm:$0xff] %v2779_v42  ;;  %4284 = vst [vmem:[#allocation147_spill] sm:$0xff] %v2781_v30  ;;  %v2829_v42 = vld [vmem:[#allocation2 + $0x2b8] sm:$0xff]  ;;  %v2834_v30 = vadd.f32 %v2347_v47, %v2790_v0  ;;  %v2888_v24 = vadd.f32 %v2347_v47, %v2840_v7 }
  0x90   :  { %4285 = vst [vmem:[#allocation148_spill] sm:$0xff] %v2786_v61  ;;  %4286 = vst [vmem:[#allocation149_spill] sm:$0xff] %v2790_v0  ;;  %v2847_v61 = vld [vmem:[#allocation2 + $0x2d0] sm:$0xff] }
  0x91   :  { %4287 = vst [vmem:[#allocation150_spill] sm:$0xff] %v2795_v54  ;;  %4288 = vst [vmem:[#allocation151_spill] sm:$0xff] %v2797_v23  ;;  %v2868_v54 = vadd.f32 %v2279_v38, %v2827_v63  ;;  %v2872_v23 = vadd.f32 %v2279_v38, %v2829_v42  ;;  %v129_v0 = vld [vmem:[#allocation2 + $0x350] sm:$0xff] }
  0x92   :  { %4289 = vst [vmem:[#allocation152_spill] sm:$0xff] %v2801_v10  ;;  %4290 = vst [vmem:[#allocation153_spill] sm:$0xff] %v2803_v17  ;;  %v2880_v17 = vadd.f32 %v2279_v38, %v2847_v61  ;;  %v2892_v10 = vadd.f32 %v2279_v38, %v2859_v59 }
  0x93   :  { %4291 = vst [vmem:[#allocation154_spill] sm:$0xff] %v2808_v8  ;;  %4292 = vst [vmem:[#allocation155_spill] sm:$0xff] %v2812_v51  ;;  %v123_v8 = vld [vmem:[#allocation2 + $0x320] sm:$0xff]  ;;  %v120_v51 = vld [vmem:[#allocation2 + $0x308] sm:$0xff] }
  0x94   :  { %4293 = vst [vmem:[#allocation156_spill] sm:$0xff] %v2816_v15  ;;  %4294 = vst [vmem:[#allocation157_spill] sm:$0xff] %v2818_v36  ;;  %v122_v36 = vld [vmem:[#allocation2 + $0x318] sm:$0xff]  ;;  %v2904_v48 = vadd.f32 %v2468_v20, %v123_v8  ;;  %v2917_v8 = vadd.f32 %v2347_v47, %v2874_v22  ;;  %v2928_v15 = vadd.f32 %v2468_v20, %v135_v49 }
  0x95   :  { %4295 = vst [vmem:[#allocation158_spill] sm:$0xff] %v2823_v41  ;;  %4296 = vst [vmem:[#allocation159_spill] sm:$0xff] %v2827_v63  ;;  %v2901_v63 = vadd.f32 %v2347_v47, %v2855_v39  ;;  %v128_v41 = vld [vmem:[#allocation2 + $0x348] sm:$0xff] }
  0x96   :  { %4297 = vst [vmem:[#allocation160_spill] sm:$0xff] %v2829_v42  ;;  %4298 = vst [vmem:[#allocation161_spill] sm:$0xff] %v2834_v30  ;;  %v119_v42 = vld [vmem:[#allocation2 + $0x300] sm:$0xff]  ;;  %v2921_v30 = vadd.f32 %v2347_v47, %v2882_v18 }
  0x97   :  { %4299 = vst [vmem:[#allocation162_spill] sm:$0xff] %v2838_v27  ;;  %4300 = vst [vmem:[#allocation163_spill] sm:$0xff] %v2840_v7  ;;  %v2910_v7 = vadd.f32 %v2279_v38, %v122_v36  ;;  %v2941_v36 = vadd.f32 %v2279_v38, %v128_v41  ;;  %v4319_v41 = vmax.f32 %v2283_v58, 0.0 }
  0x98   :  { %4301 = vst [vmem:[#allocation164_spill] sm:$0xff] %v2844_v12  ;;  %4302 = vst [vmem:[#allocation165_spill] sm:$0xff] %v2847_v61  ;;  %v2897_v61 = vadd.f32 %v2347_v47, %v2853_v44 }
  0x99   :  { %4303 = vst [vmem:[#allocation166_spill] sm:$0xff] %v2851_v6  ;;  %4304 = vst [vmem:[#allocation167_spill] sm:$0xff] %v2853_v44  ;;  %v125_v6 = vld [vmem:[#allocation2 + $0x330] sm:$0xff]  ;;  %v2913_v44 = vadd.f32 %v2279_v38, %v119_v42  ;;  %v2931_v42 = vadd.f32 %v2279_v38, %v134_v32 }
  0x9a   :  { %4305 = vst [vmem:[#allocation168_spill] sm:$0xff] %v2855_v39  ;;  %4306 = vst [vmem:[#allocation169_spill] sm:$0xff] %v2859_v59  ;;  %v126_v39 = vld [vmem:[#allocation2 + $0x338] sm:$0xff]  ;;  %v2924_v59 = vadd.f32 %v2468_v20, %v120_v51  ;;  %v2938_v51 = vadd.f32 %v2468_v20, %v129_v0  ;;  %v2947_v32 = vadd.f32 %v2279_v38, %v125_v6 }
  0x9b   :  { %4307 = vst [vmem:[#allocation170_spill] sm:$0xff] %v2864_v26  ;;  %4308 = vst [vmem:[#allocation171_spill] sm:$0xff] %v2872_v23  ;;  %v2944_v49 = vadd.f32 %v2468_v20, %v126_v39  ;;  %v1717_v26 = vld [vmem:[#allocation2 + $0x30] sm:$0xff] }
  0x9c   :  { %4309 = vst [vmem:[#allocation172_spill] sm:$0xff] %v2874_v22  ;;  %4310 = vst [vmem:[#allocation173_spill] sm:$0xff] %v2882_v18  ;;  %v131_v18 = vld [vmem:[#allocation2 + $0x360] sm:$0xff]  ;;  %v132_v22 = vld [vmem:[#allocation2 + $0x368] sm:$0xff] }
  0x9d   :  { %4311 = vst [vmem:[#allocation174_spill] sm:$0xff] %v2897_v61  ;;  %4312 = vst [vmem:[#allocation175_spill] sm:$0xff] %v2901_v63  ;;  %v2956_v23 = vadd.f32 %v2468_v20, %v132_v22  ;;  %v2959_v39 = vadd.f32 %v2279_v38, %v131_v18  ;;  %v1716_v20 = vld [vmem:[#allocation2] sm:$0xff] }
  0x9e   :  { %4313 = vst [vmem:[#allocation176_spill] sm:$0xff] %v2921_v30  ;;  %4314 = vst [vmem:[#allocation177_spill] sm:$0xff] %v2928_v15 }
  0x9f   :  { %4315 = vst [vmem:[#allocation178_spill] sm:$0xff] %v2931_v42  ;;  %4316 = vst [vmem:[#allocation179_spill] sm:$0xff] %v2938_v51 }
  0xa0   :  { %4317 = vst [vmem:[#allocation180_spill] sm:$0xff] %v2956_v23  ;;  %4318 = vst [vmem:[#allocation181_spill] sm:$0xff] %v2959_v39 }
  0xa6   :  { %v413_v63 = vpop.xlane.xlu0 %412 }
  0xa7   :  { %v732_v6 = vsub.f32 0.2, %v413_v63 }
  0xa8   :  { %v423_v61 = vpop.xlane.xlu1 %422 }
  0xa9   :  { %v734_v12 = vsub.f32 0.2, %v423_v61  ;;  %v773_v22 = vadd.f32 %v1716_v20, %v732_v6  ;;  %v774_v38 = vadd.f32 %v732_v6, %v2560_v57  ;;  %v775_v63 = vadd.f32 %v732_v6, %v2363_v28 }
  0xaa   :  { %v418_v0 = vpop.xlane.xlu0 %417 }
  0xab   :  { %v2970_v15 = vadd.f32 %v1717_v26, %v734_v12  ;;  %v2973_v47 = vadd.f32 %v734_v12, %v2574_v40  ;;  %v2976_v61 = vadd.f32 %v734_v12, %v2376_v60  ;;  %v887_v30 = vmax.f32 %v773_v22, 0.0  ;;  %v1718_v40 = vld [vmem:[#allocation2 + $0x18] sm:$0xff] }
  0xac   :  { %v888_v20 = vmax.f32 %v774_v38, 0.0  ;;  %v889_v27 = vmax.f32 %v775_v63, 0.0  ;;  %v733_v57 = vsub.f32 0.2, %v418_v0  ;;  %v428_v42 = vpop.xlane.xlu1 %427  ;;  %v1719_v38 = vld [vmem:[#allocation2 + $0x48] sm:$0xff] }
  0xad   :  { %v735_v18 = vsub.f32 0.2, %v428_v42  ;;  %v1229_v22 = vadd.f32 %v4319_v41, %v887_v30  ;;  %v4320_v42 = vmax.f32 %v2595_v53, 0.0  ;;  %v4327_v4 = vmax.f32 %v2973_v47, 0.0 }
  0xae   :  { %v776_v23 = vadd.f32 %v1718_v40, %v733_v57  ;;  %v777_v60 = vadd.f32 %v733_v57, %v2562_v56  ;;  %v778_v12 = vadd.f32 %v733_v57, %v2365_v9  ;;  %v433_v26 = vpop.xlane.xlu0 %432 }
  0xaf   :  { %v2986_v63 = vadd.f32 %v1719_v38, %v735_v18  ;;  %v2989_v0 = vadd.f32 %v735_v18, %v2576_v52  ;;  %v2992_v6 = vadd.f32 %v735_v18, %v2378_v45  ;;  %v1230_v40 = vadd.f32 %v4320_v42, %v888_v20  ;;  %v1720_v38 = vld [vmem:[#allocation2 + $0x60] sm:$0xff]  ;;  %v1721_v20 = vld [vmem:[#allocation2 + $0x78] sm:$0xff] }
  0xb0   :  { %v890_v28 = vmax.f32 %v776_v23, 0.0  ;;  %v891_v56 = vmax.f32 %v777_v60, 0.0  ;;  %v892_v39 = vmax.f32 %v778_v12, 0.0  ;;  %v736_v9 = vsub.f32 0.2, %v433_v26  ;;  %v438_v57 = vpop.xlane.xlu1 %437 }
  0xb1   :  { %v896_v58 = vmax.f32 %v2986_v63, 0.0  ;;  %v897_v30 = vmax.f32 %v2989_v0, 0.0  ;;  %v737_v52 = vsub.f32 0.2, %v438_v57  ;;  %v4321_v23 = vmax.f32 %v2405_v14, 0.0  ;;  %v1723_v14 = vld [vmem:[#allocation2 + $0xa8] sm:$0xff] }
  0xb2   :  { %v2999_v51 = vadd.f32 %v1720_v38, %v736_v9  ;;  %v3002_v45 = vadd.f32 %v736_v9, %v2578_v29  ;;  %v3005_v53 = vadd.f32 %v736_v9, %v2380_v31  ;;  %v443_v42 = vpop.xlane.xlu0 %442  ;;  %v1343_v29 = vsel %vm180_vm0, 0.0, %v1229_v22  ;;  %v4339_v63 = vld [vmem:[#allocation46_spill] sm:$0xff]  ;;  %v4341_v0 = vld [vmem:[#allocation101_spill] sm:$0xff] }
  0xb3   :  { %v1231_v18 = vadd.f32 %v4321_v23, %v889_v27  ;;  %v3009_v26 = vadd.f32 %v1721_v20, %v737_v52  ;;  %v3012_v60 = vadd.f32 %v737_v52, %v2587_v33  ;;  %v3015_v12 = vadd.f32 %v737_v52, %v2392_v16  ;;  %v1722_v23 = vld [vmem:[#allocation2 + $0x90] sm:$0xff] }
  0xb4   :  { %v738_v27 = vsub.f32 0.2, %v443_v42  ;;  %v448_v57 = vpop.xlane.xlu1 %447  ;;  %v1457_v9 = vadd.f32 %v1343_v29, %v1230_v40  ;;  %v4323_v16 = vmax.f32 %v2599_v37, 0.0 }
  0xb5   :  { %v739_v52 = vsub.f32 0.2, %v448_v57  ;;  %v1458_v57 = vsel %vm409_vm11, %v1231_v18, 0.0  ;;  %v4322_v18 = vmax.f32 %v2291_v11, 0.0  ;;  %v4326_v11 = vmax.f32 %v2287_v19, 0.0 }
  0xb6   :  { %v3026_v20 = vadd.f32 %v1722_v23, %v738_v27  ;;  %v3029_v1 = vadd.f32 %v738_v27, %v2589_v21  ;;  %v3032_v22 = vadd.f32 %v738_v27, %v2399_v13  ;;  %v453_v23 = vpop.xlane.xlu0 %452  ;;  %v1459_v27 = vadd.f32 %v1458_v57, %v1457_v9  ;;  %v1724_v9 = vld [vmem:[#allocation2 + $0xc0] sm:$0xff] }
  0xb7   :  { %v3034_v42 = vadd.f32 %v1723_v14, %v739_v52  ;;  %v3037_v38 = vadd.f32 %v739_v52, %v2601_v43  ;;  %v3040_v33 = vadd.f32 %v739_v52, %v2401_v62  ;;  %v740_v31 = vsub.f32 0.2, %v453_v23 }
  0xb8   :  { %v458_v40 = vpop.xlane.xlu1 %457  ;;  %1460 = vadd.xlane.f32.xlu0 %v1459_v27  ;;  %v1232_v52 = vadd.f32 %v4322_v18, %v890_v28  ;;  %v1233_v41 = vadd.f32 %v4323_v16, %v891_v56  ;;  %v4324_v21 = vmax.f32 %v2409_v5, 0.0  ;;  %v4325_v23 = vmax.f32 %v2970_v15, 0.0  ;;  %v1725_v27 = vld [vmem:[#allocation2 + $0xd8] sm:$0xff] }
  0xb9   :  { %v909_v14 = vmax.f32 %v3037_v38, 0.0  ;;  %v741_v62 = vsub.f32 0.2, %v458_v40  ;;  %v3055_v57 = vadd.f32 %v1724_v9, %v740_v31  ;;  %v3058_v29 = vadd.f32 %v740_v31, %v2603_v25 }
  0xba   :  { %v1234_v13 = vadd.f32 %v4324_v21, %v892_v39  ;;  %v3061_v43 = vadd.f32 %v740_v31, %v2412_v35  ;;  %v1235_v28 = vadd.f32 %v4326_v11, %v4325_v23  ;;  %v1346_v25 = vsel %vm183_vm2, 0.0, %v1232_v52  ;;  %v463_v31 = vpop.xlane.xlu0 %462 }
  0xbb   :  { %v3067_v37 = vadd.f32 %v1725_v27, %v741_v62  ;;  %v3070_v5 = vadd.f32 %v741_v62, %v2605_v50  ;;  %v3073_v39 = vadd.f32 %v741_v62, %v2428_v55  ;;  %v911_v35 = vmax.f32 %v3055_v57, 0.0 }
  0xbc   :  { %v912_v15 = vmax.f32 %v3058_v29, 0.0  ;;  %v913_v19 = vmax.f32 %v3061_v43, 0.0  ;;  %v1462_v56 = vadd.f32 %v1346_v25, %v1233_v41  ;;  %v468_v16 = vpop.xlane.xlu1 %467  ;;  %v1463_v40 = vsel %vm409_vm11, %v1234_v13, 0.0 }
  0xbd   :  { %v914_v21 = vmax.f32 %v3067_v37, 0.0  ;;  %v4328_v18 = vmax.f32 %v2610_v34, 0.0  ;;  %v4329_v9 = vmax.f32 %v2976_v61, 0.0  ;;  %v4330_v41 = vmax.f32 %v2416_v46, 0.0  ;;  %v4333_v34 = vld [vmem:[#allocation99_spill] sm:$0xff] }
  0xbe   :  { %v1464_v62 = vadd.f32 %v1463_v40, %v1462_v56  ;;  %v1349_v27 = vsel %vm186_vm1, 0.0, %v1235_v28  ;;  %v742_v25 = vsub.f32 0.2, %v463_v31  ;;  %v743_v50 = vsub.f32 0.2, %v468_v16 }
  0xbf   :  { %v1236_v52 = vadd.f32 %v4328_v18, %v4327_v4  ;;  %v1237_v23 = vadd.f32 %v4330_v41, %v4329_v9  ;;  %v4332_v13 = vmax.f32 %v2295_v3, 0.0  ;;  %v4334_v47 = vmax.f32 %v4333_v34, 0.0  ;;  %v4336_v18 = vld [vmem:[#allocation64_spill] sm:$0xff] }
  0xc0   :  { %1465 = vadd.xlane.f32.xlu1 %v1464_v62  ;;  %v4335_v4 = vmax.f32 %v2992_v6, 0.0  ;;  %v4337_v28 = vmax.f32 %v4336_v18, 0.0  ;;  %v4338_v16 = vmax.f32 %v2999_v51, 0.0  ;;  %v4340_v9 = vmax.f32 %v4339_v63, 0.0  ;;  %v4344_v51 = vld [vmem:[#allocation68_spill] sm:$0xff]  ;;  %v473_v18 = vpop.xlane.xlu0 %472  ;;  %v4360_v63 = vld [vmem:[#allocation74_spill] sm:$0xff] }
  0xc1   :  { %v1238_v56 = vadd.f32 %v4332_v13, %v896_v58  ;;  %v1239_v40 = vadd.f32 %v4334_v47, %v897_v30  ;;  %v1467_v61 = vadd.f32 %v1349_v27, %v1236_v52  ;;  %v1468_v46 = vsel %vm409_vm11, %v1237_v23, 0.0  ;;  %v1726_v58 = vld [vmem:[#allocation2 + $0xf0] sm:$0xff]  ;;  %v1727_v52 = vld [vmem:[#allocation2 + $0x108] sm:$0xff] }
  0xc2   :  { %v1240_v31 = vadd.f32 %v4337_v28, %v4335_v4  ;;  %v1241_v3 = vadd.f32 %v4340_v9, %v4338_v16  ;;  %v3113_v41 = vadd.f32 %v1726_v58, %v742_v25  ;;  %v3116_v11 = vadd.f32 %v742_v25, %v4341_v0  ;;  %v4342_v30 = vld [vmem:[#allocation67_spill] sm:$0xff]  ;;  %v4343_v27 = vld [vmem:[#allocation102_spill] sm:$0xff]  ;;  %v4347_v0 = vld [vmem:[#allocation100_spill] sm:$0xff] }
  0xc3   :  { %v3119_v62 = vadd.f32 %v742_v25, %v4342_v30  ;;  %v3121_v23 = vadd.f32 %v1727_v52, %v743_v50  ;;  %v1469_v6 = vadd.f32 %v1468_v46, %v1467_v61  ;;  %v3124_v13 = vadd.f32 %v743_v50, %v4343_v27  ;;  %v478_v61 = vpop.xlane.xlu1 %477 }
  0xc4   :  { %v3127_v34 = vadd.f32 %v743_v50, %v4344_v51  ;;  %v1352_v4 = vsel %vm189_vm3, 0.0, %v1238_v56  ;;  %v1473_v58 = vsel %vm409_vm11, %v1240_v31, 0.0  ;;  %v4346_v56 = vmax.f32 %v3002_v45, 0.0  ;;  %v4350_v51 = vld [vmem:[#allocation65_spill] sm:$0xff]  ;;  %v4354_v31 = vld [vmem:[#allocation47_spill] sm:$0xff] }
  0xc5   :  { %1470 = vadd.xlane.f32.xlu0 %v1469_v6  ;;  %v1472_v9 = vadd.f32 %v1352_v4, %v1239_v40  ;;  %v4348_v30 = vmax.f32 %v4347_v0, 0.0  ;;  %v4349_v27 = vmax.f32 %v3005_v53, 0.0  ;;  %v4351_v47 = vmax.f32 %v4350_v51, 0.0  ;;  %v1728_v51 = vld [vmem:[#allocation2 + $0x120] sm:$0xff] }
  0xc6   :  { %v1355_v6 = vsel %vm192_vm4, 0.0, %v1241_v3  ;;  %v744_v46 = vsub.f32 0.2, %v473_v18  ;;  %v745_v50 = vsub.f32 0.2, %v478_v61  ;;  %v4353_v40 = vmax.f32 %v3009_v26, 0.0 }
  0xc7   :  { %v1242_v52 = vadd.f32 %v4348_v30, %v4346_v56  ;;  %v1243_v16 = vadd.f32 %v4351_v47, %v4349_v27  ;;  %v1474_v25 = vadd.f32 %v1473_v58, %v1472_v9  ;;  %v4355_v4 = vmax.f32 %v4354_v31, 0.0  ;;  %v4357_v56 = vld [vmem:[#allocation103_spill] sm:$0xff]  ;;  %v4359_v3 = vld [vmem:[#allocation105_spill] sm:$0xff] }
  0xc8   :  { %v4356_v0 = vmax.f32 %v3012_v60, 0.0  ;;  %v4358_v30 = vmax.f32 %v4357_v56, 0.0  ;;  %v3159_v47 = vadd.f32 %v1728_v51, %v744_v46  ;;  %v3162_v18 = vadd.f32 %v744_v46, %v4359_v3  ;;  %v1729_v61 = vld [vmem:[#allocation2 + $0x138] sm:$0xff]  ;;  %v483_v56 = vpop.xlane.xlu0 %482 }
  0xc9   :  { %v1244_v45 = vadd.f32 %v4355_v4, %v4353_v40  ;;  %v1477_v28 = vadd.f32 %v1355_v6, %v1242_v52  ;;  %v1478_v27 = vsel %vm409_vm11, %v1243_v16, 0.0  ;;  %1475 = vadd.xlane.f32.xlu1 %v1474_v25  ;;  %v3165_v26 = vadd.f32 %v744_v46, %v4360_v63  ;;  %v4361_v60 = vld [vmem:[#allocation109_spill] sm:$0xff]  ;;  %v4362_v40 = vld [vmem:[#allocation82_spill] sm:$0xff] }
  0xca   :  { %v1245_v53 = vadd.f32 %v4358_v30, %v4356_v0  ;;  %v3167_v9 = vadd.f32 %v1729_v61, %v745_v50  ;;  %v3170_v58 = vadd.f32 %v745_v50, %v4361_v60  ;;  %v3173_v52 = vadd.f32 %v745_v50, %v4362_v40  ;;  %v4364_v25 = vld [vmem:[#allocation66_spill] sm:$0xff]  ;;  %v488_v30 = vpop.xlane.xlu1 %487  ;;  %v4368_v60 = vld [vmem:[#allocation48_spill] sm:$0xff] }
  0xcb   :  { %v1479_v16 = vadd.f32 %v1478_v27, %v1477_v28  ;;  %v4363_v4 = vmax.f32 %v3015_v12, 0.0  ;;  %v4365_v0 = vmax.f32 %v4364_v25, 0.0  ;;  %v1358_v27 = vsel %vm195_vm5, 0.0, %v1244_v45 }
  0xcc   :  { %v4367_v61 = vmax.f32 %v3026_v20, 0.0  ;;  %v4369_v40 = vmax.f32 %v4368_v60, 0.0  ;;  %v4370_v25 = vmax.f32 %v3029_v1, 0.0  ;;  %v1482_v63 = vadd.f32 %v1358_v27, %v1245_v53 }
  0xcd   :  { %v1246_v46 = vadd.f32 %v4365_v0, %v4363_v4  ;;  %1480 = vadd.xlane.f32.xlu0 %v1479_v16  ;;  %v4371_v0 = vld [vmem:[#allocation104_spill] sm:$0xff]  ;;  %v4373_v50 = vmax.f32 %v3032_v22, 0.0  ;;  %v4374_v16 = vld [vmem:[#allocation69_spill] sm:$0xff]  ;;  %v746_v28 = vsub.f32 0.2, %v483_v56  ;;  %v4382_v22 = vmax.f32 %v3040_v33, 0.0 }
  0xce   :  { %v1247_v4 = vadd.f32 %v4369_v40, %v4367_v61  ;;  %v4372_v3 = vmax.f32 %v4371_v0, 0.0  ;;  %v4375_v31 = vmax.f32 %v4374_v16, 0.0  ;;  %v747_v45 = vsub.f32 0.2, %v488_v30  ;;  %v4378_v61 = vld [vmem:[#allocation49_spill] sm:$0xff]  ;;  %v4383_v40 = vld [vmem:[#allocation70_spill] sm:$0xff] }
  0xcf   :  { %v1483_v12 = vsel %vm409_vm11, %v1246_v46, 0.0  ;;  %v4377_v46 = vmax.f32 %v3034_v42, 0.0  ;;  %v4379_v60 = vmax.f32 %v4378_v61, 0.0  ;;  %v4385_v42 = vld [vmem:[#allocation110_spill] sm:$0xff]  ;;  %v4387_v33 = vld [vmem:[#allocation113_spill] sm:$0xff] }
  0xd0   :  { %v1248_v51 = vadd.f32 %v4372_v3, %v4370_v25  ;;  %v1249_v6 = vadd.f32 %v4375_v31, %v4373_v50  ;;  %v1361_v20 = vsel %vm198_vm6, 0.0, %v1247_v4  ;;  %v4380_v3 = vld [vmem:[#allocation106_spill] sm:$0xff]  ;;  %v4384_v31 = vmax.f32 %v4383_v40, 0.0  ;;  %v1730_v4 = vld [vmem:[#allocation2 + $0x150] sm:$0xff] }
  0xd1   :  { %v1250_v1 = vadd.f32 %v4379_v60, %v4377_v46  ;;  %v4381_v53 = vmax.f32 %v4380_v3, 0.0  ;;  %v1484_v30 = vadd.f32 %v1483_v12, %v1482_v63  ;;  %v3217_v25 = vadd.f32 %v1730_v4, %v746_v28  ;;  %v4386_v16 = vld [vmem:[#allocation118_spill] sm:$0xff]  ;;  %v493_v3 = vpop.xlane.xlu0 %492 }
  0xd2   :  { %v1252_v56 = vadd.f32 %v4384_v31, %v4382_v22  ;;  %v1487_v50 = vadd.f32 %v1361_v20, %v1248_v51  ;;  %v1488_v55 = vsel %vm409_vm11, %v1249_v6, 0.0  ;;  %v3220_v0 = vadd.f32 %v746_v28, %v4385_v42  ;;  %v1731_v46 = vld [vmem:[#allocation2 + $0x168] sm:$0xff]  ;;  %v4388_v6 = vld [vmem:[#allocation121_spill] sm:$0xff] }
  0xd3   :  { %v1251_v27 = vadd.f32 %v4381_v53, %v909_v14  ;;  %v3223_v38 = vadd.f32 %v746_v28, %v4386_v16  ;;  %v3225_v14 = vadd.f32 %v1731_v46, %v747_v45  ;;  %v3228_v61 = vadd.f32 %v747_v45, %v4387_v33  ;;  %1485 = vadd.xlane.f32.xlu1 %v1484_v30  ;;  %v498_v28 = vpop.xlane.xlu1 %497  ;;  %v4392_v42 = vld [vmem:[#allocation107_spill] sm:$0xff] }
  0xd4   :  { %v1489_v63 = vadd.f32 %v1488_v55, %v1487_v50  ;;  %v929_v51 = vmax.f32 %v3217_v25, 0.0  ;;  %v3232_v12 = vadd.f32 %v747_v45, %v4388_v6  ;;  %v1364_v60 = vsel %vm201_vm7, 0.0, %v1250_v1  ;;  %v4390_v55 = vld [vmem:[#allocation50_spill] sm:$0xff]  ;;  %v4394_v33 = vld [vmem:[#allocation71_spill] sm:$0xff] }
  0xd5   :  { %v930_v53 = vmax.f32 %v3220_v0, 0.0  ;;  %v931_v22 = vmax.f32 %v3223_v38, 0.0  ;;  %v932_v40 = vmax.f32 %v3225_v14, 0.0  ;;  %v933_v31 = vmax.f32 %v3228_v61, 0.0  ;;  %v1738_v14 = vld [vmem:[#allocation2 + $0x218] sm:$0xff] }
  0xd6   :  { %1490 = vadd.xlane.f32.xlu0 %v1489_v63  ;;  %v1492_v50 = vadd.f32 %v1364_v60, %v1251_v27  ;;  %v1493_v45 = vsel %vm409_vm11, %v1252_v56, 0.0  ;;  %v4391_v1 = vmax.f32 %v4390_v55, 0.0  ;;  %v4393_v16 = vmax.f32 %v4392_v42, 0.0 }
  0xd7   :  { %v4395_v6 = vmax.f32 %v4394_v33, 0.0  ;;  %v748_v20 = vsub.f32 0.2, %v493_v3  ;;  %v749_v30 = vsub.f32 0.2, %v498_v28  ;;  %v4399_v55 = vmax.f32 %v3070_v5, 0.0 }
  0xd8   :  { %v1253_v4 = vadd.f32 %v4391_v1, %v911_v35  ;;  %v1254_v46 = vadd.f32 %v4393_v16, %v912_v15  ;;  %v1494_v27 = vadd.f32 %v1493_v45, %v1492_v50  ;;  %v4397_v35 = vld [vmem:[#allocation51_spill] sm:$0xff]  ;;  %v4400_v15 = vld [vmem:[#allocation108_spill] sm:$0xff]  ;;  %v4404_v16 = vld [vmem:[#allocation73_spill] sm:$0xff]  ;;  %v4473_v38 = vmax.f32 %v3232_v12, 0.0 }
  0xd9   :  { %v1255_v63 = vadd.f32 %v4395_v6, %v913_v19  ;;  %v4398_v56 = vmax.f32 %v4397_v35, 0.0  ;;  %v4401_v1 = vmax.f32 %v4400_v15, 0.0  ;;  %v4402_v3 = vld [vmem:[#allocation72_spill] sm:$0xff]  ;;  %v1732_v50 = vld [vmem:[#allocation2 + $0x188] sm:$0xff]  ;;  %v1733_v5 = vld [vmem:[#allocation2 + $0x1a0] sm:$0xff]  ;;  %v4406_v35 = vmax.f32 %v3073_v39, 0.0  ;;  %v508_v15 = vpop.xlane.xlu1 %507 }
  0xda   :  { %v1367_v57 = vsel %vm204_vm8, 0.0, %v1253_v4  ;;  %v3268_v28 = vadd.f32 %v748_v20, %v4402_v3  ;;  %v3270_v45 = vadd.f32 %v1732_v50, %v748_v20  ;;  %1495 = vadd.xlane.f32.xlu1 %v1494_v27  ;;  %v4403_v4 = vld [vmem:[#allocation123_spill] sm:$0xff]  ;;  %v3278_v33 = vadd.f32 %v1733_v5, %v749_v30  ;;  %v4405_v6 = vld [vmem:[#allocation125_spill] sm:$0xff] }
  0xdb   :  { %v1256_v29 = vadd.f32 %v4398_v56, %v914_v21  ;;  %v1257_v43 = vadd.f32 %v4401_v1, %v4399_v55  ;;  %v1497_v42 = vadd.f32 %v1367_v57, %v1254_v46  ;;  %v1498_v19 = vsel %vm409_vm11, %v1255_v63, 0.0  ;;  %v4407_v27 = vld [vmem:[#allocation75_spill] sm:$0xff]  ;;  %v503_v55 = vpop.xlane.xlu0 %502 }
  0xdc   :  { %v3273_v37 = vadd.f32 %v748_v20, %v4403_v4  ;;  %v3276_v21 = vadd.f32 %v749_v30, %v4404_v16  ;;  %v3281_v46 = vadd.f32 %v749_v30, %v4405_v6  ;;  %v4408_v56 = vmax.f32 %v4407_v27, 0.0  ;;  %v4412_v16 = vld [vmem:[#allocation52_spill] sm:$0xff]  ;;  %v4415_v27 = vld [vmem:[#allocation111_spill] sm:$0xff] }
  0xdd   :  { %v1499_v63 = vadd.f32 %v1498_v19, %v1497_v42  ;;  %v4409_v42 = vld [vmem:[#allocation15_spill] sm:$0xff]  ;;  %v4411_v4 = vmax.f32 %v3113_v41, 0.0  ;;  %v4413_v5 = vmax.f32 %v4412_v16, 0.0  ;;  %v4417_v30 = vmax.f32 %v3119_v62, 0.0 }
  0xde   :  { %v1258_v20 = vadd.f32 %v4408_v56, %v4406_v35  ;;  %vm4410_vm0 = vcmp.eq.s32.totalorder %v4409_v42, %v1842_v2  ;;  %v4414_v35 = vmax.f32 %v3116_v11, 0.0  ;;  %v4416_v56 = vmax.f32 %v4415_v27, 0.0  ;;  %v4428_v27 = vld [vmem:[#allocation77_spill] sm:$0xff]  ;;  %v1739_v12 = vld [vmem:[#allocation2 + $0x230] sm:$0xff] }
  0xdf   :  { %1500 = vadd.xlane.f32.xlu0 %v1499_v63  ;;  %v1370_v19 = vsel %vm4410_vm0, 0.0, %v1256_v29  ;;  %v1259_v6 = vadd.f32 %v4413_v5, %v4411_v4  ;;  %v4418_v63 = vld [vmem:[#allocation76_spill] sm:$0xff]  ;;  %v750_v42 = vsub.f32 0.2, %v503_v55  ;;  %v751_v29 = vsub.f32 0.2, %v508_v15 }
  0xe0   :  { %v1503_v39 = vsel %vm409_vm11, %v1258_v20, 0.0  ;;  %v1260_v3 = vadd.f32 %v4416_v56, %v4414_v35  ;;  %v1502_v50 = vadd.f32 %v1370_v19, %v1257_v43  ;;  %v4419_v1 = vmax.f32 %v4418_v63, 0.0  ;;  %v4422_v4 = vld [vmem:[#allocation53_spill] sm:$0xff]  ;;  %v4425_v35 = vld [vmem:[#allocation112_spill] sm:$0xff] }
  0xe1   :  { %v1373_v41 = vsel %vm210_vm10, 0.0, %v1259_v6  ;;  %v4421_v20 = vmax.f32 %v3121_v23, 0.0  ;;  %v4423_v16 = vmax.f32 %v4422_v4, 0.0  ;;  %v4424_v5 = vmax.f32 %v3124_v13, 0.0  ;;  %v4430_v6 = vld [vmem:[#allocation115_spill] sm:$0xff]  ;;  %v1734_v23 = vld [vmem:[#allocation2 + $0x1b8] sm:$0xff] }
  0xe2   :  { %v1261_v57 = vadd.f32 %v4419_v1, %v4417_v30  ;;  %v4426_v43 = vmax.f32 %v4425_v35, 0.0  ;;  %v4427_v62 = vmax.f32 %v3127_v34, 0.0  ;;  %v4429_v1 = vmax.f32 %v4428_v27, 0.0  ;;  %v4432_v4 = vld [vmem:[#allocation116_spill] sm:$0xff]  ;;  %v4443_v27 = vld [vmem:[#allocation83_spill] sm:$0xff] }
  0xe3   :  { %v1262_v11 = vadd.f32 %v4423_v16, %v4421_v20  ;;  %v1504_v15 = vadd.f32 %v1503_v39, %v1502_v50  ;;  %v1507_v30 = vadd.f32 %v1373_v41, %v1260_v3  ;;  %v3326_v56 = vadd.f32 %v750_v42, %v4430_v6  ;;  %v4431_v20 = vld [vmem:[#allocation126_spill] sm:$0xff]  ;;  %v1735_v34 = vld [vmem:[#allocation2 + $0x1d0] sm:$0xff]  ;;  %v4434_v41 = vld [vmem:[#allocation17_spill] sm:$0xff] }
  0xe4   :  { %v1263_v19 = vadd.f32 %v4426_v43, %v4424_v5  ;;  %v1264_v55 = vadd.f32 %v4429_v1, %v4427_v62  ;;  %v1508_v60 = vsel %vm409_vm11, %v1261_v57, 0.0  ;;  %v3328_v63 = vadd.f32 %v1734_v23, %v750_v42  ;;  %v4433_v57 = vld [vmem:[#allocation129_spill] sm:$0xff]  ;;  %v513_v43 = vpop.xlane.xlu0 %512  ;;  %v4437_v23 = vld [vmem:[#allocation54_spill] sm:$0xff] }
  0xe5   :  { %v3331_v13 = vadd.f32 %v750_v42, %v4431_v20  ;;  %v3334_v16 = vadd.f32 %v751_v29, %v4432_v4  ;;  %v3336_v5 = vadd.f32 %v1735_v34, %v751_v29  ;;  %1505 = vadd.xlane.f32.xlu1 %v1504_v15  ;;  %v1509_v50 = vadd.f32 %v1508_v60, %v1507_v30  ;;  %v518_v42 = vpop.xlane.xlu1 %517  ;;  %v4440_v34 = vld [vmem:[#allocation114_spill] sm:$0xff] }
  0xe6   :  { %v941_v3 = vmax.f32 %v3326_v56, 0.0  ;;  %v3340_v39 = vadd.f32 %v751_v29, %v4433_v57  ;;  %vm4435_vm1 = vcmp.eq.s32.totalorder %v4434_v41, %v1842_v2  ;;  %v1513_v29 = vsel %vm409_vm11, %v1264_v55, 0.0  ;;  %v4518_v56 = vld [vmem:[#allocation128_spill] sm:$0xff] }
  0xe7   :  { %v1376_v35 = vsel %vm4435_vm1, 0.0, %v1262_v11  ;;  %1510 = vadd.xlane.f32.xlu0 %v1509_v50  ;;  %v4436_v6 = vmax.f32 %v3159_v47, 0.0  ;;  %v4438_v11 = vmax.f32 %v4437_v23, 0.0  ;;  %v4439_v4 = vmax.f32 %v3162_v18, 0.0 }
  0xe8   :  { %v1512_v60 = vadd.f32 %v1376_v35, %v1263_v19  ;;  %v4441_v57 = vmax.f32 %v4440_v34, 0.0  ;;  %v4442_v1 = vmax.f32 %v3165_v26, 0.0  ;;  %v4444_v15 = vmax.f32 %v4443_v27, 0.0  ;;  %v4445_v35 = vld [vmem:[#allocation21_spill] sm:$0xff] }
  0xe9   :  { %v1265_v20 = vadd.f32 %v4438_v11, %v4436_v6  ;;  %v752_v62 = vsub.f32 0.2, %v513_v43  ;;  %v753_v30 = vsub.f32 0.2, %v518_v42  ;;  %vm4446_vm2 = vcmp.eq.s32.totalorder %v4445_v35, %v1842_v2  ;;  %v4448_v6 = vld [vmem:[#allocation55_spill] sm:$0xff]  ;;  %v4453_v43 = vld [vmem:[#allocation120_spill] sm:$0xff] }
  0xea   :  { %v1266_v41 = vadd.f32 %v4441_v57, %v4439_v4  ;;  %v1267_v50 = vadd.f32 %v4444_v15, %v4442_v1  ;;  %v1514_v19 = vadd.f32 %v1513_v29, %v1512_v60  ;;  %v4447_v55 = vmax.f32 %v3167_v9, 0.0  ;;  %v4451_v4 = vld [vmem:[#allocation117_spill] sm:$0xff]  ;;  %v1736_v1 = vld [vmem:[#allocation2 + $0x1e8] sm:$0xff]  ;;  %v4455_v29 = vld [vmem:[#allocation124_spill] sm:$0xff] }
  0xeb   :  { %v1379_v47 = vsel %vm4446_vm2, 0.0, %v1265_v20  ;;  %v4449_v23 = vmax.f32 %v4448_v6, 0.0  ;;  %v4450_v11 = vmax.f32 %v3170_v58, 0.0  ;;  %v4452_v34 = vmax.f32 %v4451_v4, 0.0  ;;  %v4454_v60 = vld [vmem:[#allocation134_spill] sm:$0xff]  ;;  %v523_v4 = vpop.xlane.xlu0 %522 }
  0xec   :  { %v1517_v57 = vadd.f32 %v1379_v47, %v1266_v41  ;;  %v1518_v27 = vsel %vm409_vm11, %v1267_v50, 0.0  ;;  %v3376_v42 = vadd.f32 %v752_v62, %v4453_v43  ;;  %v3378_v15 = vadd.f32 %v1736_v1, %v752_v62  ;;  %1515 = vadd.xlane.f32.xlu1 %v1514_v19  ;;  %v1737_v58 = vld [vmem:[#allocation2 + $0x200] sm:$0xff]  ;;  %v4458_v19 = vld [vmem:[#allocation92_spill] sm:$0xff] }
  0xed   :  { %v1268_v18 = vadd.f32 %v4449_v23, %v4447_v55  ;;  %v1269_v26 = vadd.f32 %v4452_v34, %v4450_v11  ;;  %v3381_v9 = vadd.f32 %v752_v62, %v4454_v60  ;;  %v3384_v20 = vadd.f32 %v753_v30, %v4455_v29  ;;  %v4456_v55 = vld [vmem:[#allocation138_spill] sm:$0xff]  ;;  %v528_v34 = vpop.xlane.xlu1 %527  ;;  %v4461_v29 = vld [vmem:[#allocation56_spill] sm:$0xff]  ;;  %v4467_v43 = vld [vmem:[#allocation25_spill] sm:$0xff] }
  0xee   :  { %v3386_v35 = vadd.f32 %v1737_v58, %v753_v30  ;;  %v3389_v41 = vadd.f32 %v753_v30, %v4456_v55  ;;  %v1519_v50 = vadd.f32 %v1518_v27, %v1517_v57  ;;  %v947_v47 = vmax.f32 %v3376_v42, 0.0  ;;  %v4542_v42 = vld [vmem:[#allocation135_spill] sm:$0xff] }
  0xef   :  { %v948_v6 = vmax.f32 %v3378_v15, 0.0  ;;  %v4457_v23 = vmax.f32 %v3173_v52, 0.0  ;;  %v4459_v11 = vmax.f32 %v4458_v19, 0.0  ;;  %v1382_v27 = vsel %vm219_vm9, 0.0, %v1268_v18 }
  0xf0   :  { %1520 = vadd.xlane.f32.xlu0 %v1519_v50  ;;  %v4462_v58 = vmax.f32 %v4461_v29, 0.0  ;;  %v1522_v60 = vadd.f32 %v1382_v27, %v1269_v26  ;;  %v4465_v50 = vld [vmem:[#allocation131_spill] sm:$0xff]  ;;  %v754_v57 = vsub.f32 0.2, %v523_v4  ;;  %v755_v18 = vsub.f32 0.2, %v528_v34 }
  0xf1   :  { %v1270_v62 = vadd.f32 %v4459_v11, %v4457_v23  ;;  %v4463_v23 = vld [vmem:[#allocation119_spill] sm:$0xff]  ;;  %v4466_v30 = vmax.f32 %v4465_v50, 0.0  ;;  %vm4468_vm3 = vcmp.eq.s32.totalorder %v4467_v43, %v1842_v2  ;;  %v4474_v29 = vld [vmem:[#allocation136_spill] sm:$0xff] }
  0xf2   :  { %v1271_v55 = vadd.f32 %v4462_v58, %v929_v51  ;;  %v4464_v19 = vmax.f32 %v4463_v23, 0.0  ;;  %v4469_v51 = vld [vmem:[#allocation57_spill] sm:$0xff]  ;;  %v4476_v58 = vld [vmem:[#allocation132_spill] sm:$0xff]  ;;  %v3436_v23 = vadd.f32 %v1738_v14, %v754_v57  ;;  %v3444_v50 = vadd.f32 %v1739_v12, %v755_v18 }
  0xf3   :  { %v1523_v52 = vsel %vm409_vm11, %v1270_v62, 0.0  ;;  %v1273_v1 = vadd.f32 %v4466_v30, %v931_v22  ;;  %v4470_v62 = vmax.f32 %v4469_v51, 0.0  ;;  %v4475_v22 = vmax.f32 %v4474_v29, 0.0  ;;  %v4486_v14 = vld [vmem:[#allocation80_spill] sm:$0xff] }
  0xf4   :  { %v1272_v11 = vadd.f32 %v4464_v19, %v930_v53  ;;  %v1385_v25 = vsel %vm4468_vm3, 0.0, %v1271_v55  ;;  %v4471_v53 = vld [vmem:[#allocation122_spill] sm:$0xff]  ;;  %v1524_v34 = vadd.f32 %v1523_v52, %v1522_v60  ;;  %v3434_v55 = vadd.f32 %v754_v57, %v4476_v58  ;;  %v4478_v19 = vld [vmem:[#allocation133_spill] sm:$0xff] }
  0xf5   :  { %v1274_v0 = vadd.f32 %v4470_v62, %v932_v40  ;;  %v4472_v26 = vmax.f32 %v4471_v53, 0.0  ;;  %v1276_v4 = vadd.f32 %v4475_v22, %v4473_v38  ;;  %v1528_v43 = vsel %vm409_vm11, %v1273_v1, 0.0  ;;  %v4477_v40 = vld [vmem:[#allocation141_spill] sm:$0xff]  ;;  %v533_v62 = vpop.xlane.xlu0 %532 }
  0xf6   :  { %v1527_v30 = vadd.f32 %v1385_v25, %v1272_v11  ;;  %v3439_v61 = vadd.f32 %v754_v57, %v4477_v40  ;;  %1525 = vadd.xlane.f32.xlu1 %v1524_v34  ;;  %v953_v52 = vmax.f32 %v3434_v55, 0.0  ;;  %v4479_v1 = vld [vmem:[#allocation145_spill] sm:$0xff]  ;;  %v4480_v25 = vld [vmem:[#allocation26_spill] sm:$0xff]  ;;  %v538_v57 = vpop.xlane.xlu1 %537  ;;  %v954_v53 = vmax.f32 %v3436_v23, 0.0  ;;  %v4565_v55 = vld [vmem:[#allocation143_spill] sm:$0xff] }
  0xf7   :  { %v1275_v27 = vadd.f32 %v4472_v26, %v933_v31  ;;  %v3442_v31 = vadd.f32 %v755_v18, %v4478_v19  ;;  %v3448_v11 = vadd.f32 %v755_v18, %v4479_v1  ;;  %vm4481_vm4 = vcmp.eq.s32.totalorder %v4480_v25, %v1842_v2  ;;  %v4483_v2 = vld [vmem:[#allocation78_spill] sm:$0xff]  ;;  %v4489_v1 = vld [vmem:[#allocation137_spill] sm:$0xff] }
  0xf8   :  { %v1529_v60 = vadd.f32 %v1528_v43, %v1527_v30  ;;  %v1388_v51 = vsel %vm4481_vm4, 0.0, %v1274_v0  ;;  %v955_v26 = vmax.f32 %v3439_v61, 0.0  ;;  %v1533_v18 = vsel %vm409_vm11, %v1276_v4, 0.0 }
  0xf9   :  { %v1532_v34 = vadd.f32 %v1388_v51, %v1275_v27  ;;  %v4482_v30 = vmax.f32 %v3268_v28, 0.0  ;;  %v4484_v0 = vmax.f32 %v4483_v2, 0.0  ;;  %v4485_v58 = vmax.f32 %v3270_v45, 0.0  ;;  %v4492_v51 = vld [vmem:[#allocation79_spill] sm:$0xff]  ;;  %v4495_v2 = vld [vmem:[#allocation81_spill] sm:$0xff] }
  0xfa   :  { %1530 = vadd.xlane.f32.xlu0 %v1529_v60  ;;  %v4487_v40 = vmax.f32 %v4486_v14, 0.0  ;;  %v4488_v12 = vmax.f32 %v3273_v37, 0.0  ;;  %v4490_v25 = vmax.f32 %v4489_v1, 0.0  ;;  %v756_v29 = vsub.f32 0.2, %v533_v62  ;;  %v4498_v14 = vld [vmem:[#allocation139_spill] sm:$0xff] }
  0xfb   :  { %v1277_v43 = vadd.f32 %v4484_v0, %v4482_v30  ;;  %v757_v22 = vsub.f32 0.2, %v538_v57  ;;  %v1534_v27 = vadd.f32 %v1533_v18, %v1532_v34  ;;  %v4491_v4 = vmax.f32 %v3276_v21, 0.0  ;;  %v4500_v1 = vld [vmem:[#allocation18_spill] sm:$0xff] }
  0xfc   :  { %v1278_v19 = vadd.f32 %v4487_v40, %v4485_v58  ;;  %v1279_v60 = vadd.f32 %v4490_v25, %v4488_v12  ;;  %v4493_v28 = vmax.f32 %v4492_v51, 0.0  ;;  %v4494_v30 = vmax.f32 %v3278_v33, 0.0  ;;  %v4501_v12 = vld [vmem:[#allocation20_spill] sm:$0xff]  ;;  %v4503_v21 = vld [vmem:[#allocation146_spill] sm:$0xff] }
  0xfd   :  { %v4496_v45 = vmax.f32 %v4495_v2, 0.0  ;;  %v4497_v58 = vmax.f32 %v3281_v46, 0.0  ;;  %v4499_v37 = vmax.f32 %v4498_v14, 0.0  ;;  %vm4502_vm5 = vcmp.eq.s32.totalorder %v4500_v1, %v4501_v12  ;;  %v1740_v18 = vld [vmem:[#allocation2 + $0x248] sm:$0xff]  ;;  %1535 = vadd.xlane.f32.xlu1 %v1534_v27  ;;  %v543_v27 = vpop.xlane.xlu0 %542  ;;  %v4515_v1 = vld [vmem:[#allocation140_spill] sm:$0xff] }
  0xfe   :  { %v1280_v38 = vadd.f32 %v4493_v28, %v4491_v4  ;;  %v1392_v62 = vsel %vm4502_vm5, 0.0, %v1278_v19  ;;  %v1538_v57 = vsel %vm409_vm11, %v1279_v60, 0.0  ;;  %v3488_v34 = vadd.f32 %v756_v29, %v4503_v21  ;;  %v4504_v4 = vld [vmem:[#allocation149_spill] sm:$0xff]  ;;  %v4505_v46 = vld [vmem:[#allocation147_spill] sm:$0xff] }
  0xff   :  { %v1281_v0 = vadd.f32 %v4496_v45, %v4494_v30  ;;  %v1282_v40 = vadd.f32 %v4499_v37, %v4497_v58  ;;  %v3490_v25 = vadd.f32 %v1740_v18, %v756_v29  ;;  %v1537_v33 = vadd.f32 %v1392_v62, %v1277_v43  ;;  %v1741_v30 = vld [vmem:[#allocation2 + $0x260] sm:$0xff]  ;;  %v4506_v45 = vld [vmem:[#allocation151_spill] sm:$0xff] }
 0x100   :  { %v3493_v51 = vadd.f32 %v756_v29, %v4504_v4  ;;  %v3496_v28 = vadd.f32 %v757_v22, %v4505_v46  ;;  %v3498_v2 = vadd.f32 %v1741_v30, %v757_v22  ;;  %v3503_v58 = vadd.f32 %v757_v22, %v4506_v45  ;;  %v4507_v14 = vld [vmem:[#allocation19_spill] sm:$0xff]  ;;  %v548_v29 = vpop.xlane.xlu1 %547 }
 0x101   :  { %vm4508_vm6 = vcmp.eq.s32.totalorder %v4507_v14, %v4501_v12  ;;  %v1539_v37 = vadd.f32 %v1538_v57, %v1537_v33  ;;  %v1543_v46 = vsel %vm409_vm11, %v1282_v40, 0.0  ;;  %v4509_v22 = vld [vmem:[#allocation127_spill] sm:$0xff]  ;;  %v4512_v57 = vld [vmem:[#allocation84_spill] sm:$0xff]  ;;  %v4514_v62 = vmax.f32 %v3331_v13, 0.0 }
 0x102   :  { %v1395_v43 = vsel %vm4508_vm6, 0.0, %v1281_v0  ;;  %v4510_v30 = vmax.f32 %v4509_v22, 0.0  ;;  %v4511_v0 = vmax.f32 %v3328_v63, 0.0  ;;  %v4513_v33 = vmax.f32 %v4512_v57, 0.0  ;;  %v4524_v57 = vld [vmem:[#allocation144_spill] sm:$0xff] }
 0x103   :  { %v1542_v4 = vadd.f32 %v1395_v43, %v1280_v38  ;;  %1540 = vadd.xlane.f32.xlu0 %v1539_v37  ;;  %v4516_v21 = vmax.f32 %v4515_v1, 0.0  ;;  %v758_v18 = vsub.f32 0.2, %v543_v27  ;;  %v759_v38 = vsub.f32 0.2, %v548_v29  ;;  %v4521_v37 = vld [vmem:[#allocation85_spill] sm:$0xff] }
 0x104   :  { %v1283_v45 = vadd.f32 %v4510_v30, %v941_v3  ;;  %v1284_v14 = vadd.f32 %v4513_v33, %v4511_v0  ;;  %v4517_v40 = vmax.f32 %v3334_v16, 0.0  ;;  %v4519_v19 = vmax.f32 %v4518_v56, 0.0  ;;  %v4526_v1 = vld [vmem:[#allocation22_spill] sm:$0xff]  ;;  %v4528_v16 = vld [vmem:[#allocation152_spill] sm:$0xff] }
 0x105   :  { %v1285_v60 = vadd.f32 %v4516_v21, %v4514_v62  ;;  %v1544_v43 = vadd.f32 %v1543_v46, %v1542_v4  ;;  %v4520_v3 = vmax.f32 %v3336_v5, 0.0  ;;  %v4522_v63 = vmax.f32 %v4521_v37, 0.0  ;;  %v4529_v4 = vld [vmem:[#allocation157_spill] sm:$0xff]  ;;  %v1743_v56 = vld [vmem:[#allocation2 + $0x290] sm:$0xff] }
 0x106   :  { %v1286_v22 = vadd.f32 %v4519_v19, %v4517_v40  ;;  %v4523_v0 = vmax.f32 %v3340_v39, 0.0  ;;  %v4525_v13 = vmax.f32 %v4524_v57, 0.0  ;;  %vm4527_vm7 = vcmp.eq.s32.totalorder %v4526_v1, %v4501_v12  ;;  %v1742_v19 = vld [vmem:[#allocation2 + $0x278] sm:$0xff]  ;;  %v4531_v37 = vld [vmem:[#allocation163_spill] sm:$0xff] }
 0x107   :  { %v1287_v30 = vadd.f32 %v4522_v63, %v4520_v3  ;;  %v1398_v27 = vsel %vm4527_vm7, 0.0, %v1284_v14  ;;  %v1548_v29 = vsel %vm409_vm11, %v1285_v60, 0.0  ;;  %v3542_v62 = vadd.f32 %v758_v18, %v4528_v16  ;;  %1545 = vadd.xlane.f32.xlu1 %v1544_v43  ;;  %v4530_v39 = vld [vmem:[#allocation153_spill] sm:$0xff]  ;;  %v553_v43 = vpop.xlane.xlu0 %552 }
 0x108   :  { %v1288_v33 = vadd.f32 %v4525_v13, %v4523_v0  ;;  %v3544_v21 = vadd.f32 %v1742_v19, %v758_v18  ;;  %v1547_v5 = vadd.f32 %v1398_v27, %v1283_v45  ;;  %v3547_v46 = vadd.f32 %v758_v18, %v4529_v4  ;;  %v4532_v0 = vld [vmem:[#allocation24_spill] sm:$0xff]  ;;  %v558_v18 = vpop.xlane.xlu1 %557 }
 0x109   :  { %v3550_v40 = vadd.f32 %v759_v38, %v4530_v39  ;;  %v3552_v3 = vadd.f32 %v1743_v56, %v759_v38  ;;  %v965_v14 = vmax.f32 %v3542_v62, 0.0  ;;  %v3557_v63 = vadd.f32 %v759_v38, %v4531_v37  ;;  %v4534_v38 = vld [vmem:[#allocation130_spill] sm:$0xff] }
 0x10a   :  { %v966_v60 = vmax.f32 %v3544_v21, 0.0  ;;  %vm4533_vm8 = vcmp.eq.s32.totalorder %v4532_v0, %v4501_v12  ;;  %v1549_v57 = vadd.f32 %v1548_v29, %v1547_v5  ;;  %v1553_v4 = vsel %vm409_vm11, %v1288_v33, 0.0  ;;  %v4539_v0 = vld [vmem:[#allocation148_spill] sm:$0xff]  ;;  %v1752_v62 = vld [vmem:[#allocation2 + $0x308] sm:$0xff] }
 0x10b   :  { %v1401_v45 = vsel %vm4533_vm8, 0.0, %v1287_v30  ;;  %v4535_v39 = vmax.f32 %v4534_v38, 0.0  ;;  %v4536_v30 = vld [vmem:[#allocation86_spill] sm:$0xff]  ;;  %v4538_v37 = vmax.f32 %v3381_v9, 0.0  ;;  %v4540_v27 = vmax.f32 %v4539_v0, 0.0  ;;  %v4550_v0 = vld [vmem:[#allocation27_spill] sm:$0xff] }
 0x10c   :  { %v1552_v19 = vadd.f32 %v1401_v45, %v1286_v22  ;;  %1550 = vadd.xlane.f32.xlu0 %v1549_v57  ;;  %v4537_v29 = vmax.f32 %v4536_v30, 0.0  ;;  %v760_v16 = vsub.f32 0.2, %v553_v43  ;;  %v761_v22 = vsub.f32 0.2, %v558_v18  ;;  %v4545_v57 = vld [vmem:[#allocation87_spill] sm:$0xff] }
 0x10d   :  { %v1289_v56 = vadd.f32 %v4535_v39, %v947_v47  ;;  %v1291_v1 = vadd.f32 %v4540_v27, %v4538_v37  ;;  %v4541_v33 = vmax.f32 %v3384_v20, 0.0  ;;  %v4543_v13 = vmax.f32 %v4542_v42, 0.0  ;;  %v4548_v30 = vld [vmem:[#allocation150_spill] sm:$0xff]  ;;  %v4552_v20 = vld [vmem:[#allocation159_spill] sm:$0xff] }
 0x10e   :  { %v1290_v5 = vadd.f32 %v4537_v29, %v948_v6  ;;  %v1554_v45 = vadd.f32 %v1553_v4, %v1552_v19  ;;  %v4544_v47 = vmax.f32 %v3386_v35, 0.0  ;;  %v4546_v15 = vmax.f32 %v4545_v57, 0.0  ;;  %v4553_v4 = vld [vmem:[#allocation167_spill] sm:$0xff]  ;;  %v1745_v42 = vld [vmem:[#allocation2 + $0x2c0] sm:$0xff]  ;;  %v4555_v57 = vld [vmem:[#allocation168_spill] sm:$0xff] }
 0x10f   :  { %v1292_v38 = vadd.f32 %v4543_v13, %v4541_v33  ;;  %v4547_v6 = vmax.f32 %v3389_v41, 0.0  ;;  %v4549_v9 = vmax.f32 %v4548_v30, 0.0  ;;  %vm4551_vm9 = vcmp.eq.s32.totalorder %v4550_v0, %v4501_v12  ;;  %v1744_v13 = vld [vmem:[#allocation2 + $0x2a8] sm:$0xff]  ;;  %v4554_v41 = vld [vmem:[#allocation160_spill] sm:$0xff] }
 0x110   :  { %v1293_v39 = vadd.f32 %v4546_v15, %v4544_v47  ;;  %v1404_v43 = vsel %vm4551_vm9, 0.0, %v1290_v5  ;;  %v1558_v18 = vsel %vm409_vm11, %v1291_v1, 0.0  ;;  %v3596_v27 = vadd.f32 %v760_v16, %v4552_v20  ;;  %1555 = vadd.xlane.f32.xlu1 %v1554_v45  ;;  %v563_v45 = vpop.xlane.xlu0 %562 }
 0x111   :  { %v1294_v29 = vadd.f32 %v4549_v9, %v4547_v6  ;;  %v3598_v19 = vadd.f32 %v1744_v13, %v760_v16  ;;  %v1557_v35 = vadd.f32 %v1404_v43, %v1289_v56  ;;  %v3601_v37 = vadd.f32 %v760_v16, %v4553_v4  ;;  %v4556_v6 = vld [vmem:[#allocation28_spill] sm:$0xff]  ;;  %v568_v16 = vpop.xlane.xlu1 %567 }
 0x112   :  { %v3604_v33 = vadd.f32 %v761_v22, %v4554_v41  ;;  %v3606_v47 = vadd.f32 %v1745_v42, %v761_v22  ;;  %v971_v5 = vmax.f32 %v3596_v27, 0.0  ;;  %v3611_v15 = vadd.f32 %v761_v22, %v4555_v57  ;;  %v4558_v22 = vld [vmem:[#allocation142_spill] sm:$0xff]  ;;  %v1755_v27 = vld [vmem:[#allocation2 + $0x350] sm:$0xff] }
 0x113   :  { %v972_v1 = vmax.f32 %v3598_v19, 0.0  ;;  %vm4557_vm10 = vcmp.eq.s32.totalorder %v4556_v6, %v4501_v12  ;;  %v1559_v30 = vadd.f32 %v1558_v18, %v1557_v35  ;;  %v973_v9 = vmax.f32 %v3601_v37, 0.0  ;;  %v4562_v57 = vld [vmem:[#allocation154_spill] sm:$0xff]  ;;  %v1757_v19 = vld [vmem:[#allocation2 + $0x330] sm:$0xff] }
 0x114   :  { %v1407_v56 = vsel %vm4557_vm10, 0.0, %v1293_v39  ;;  %v1563_v4 = vsel %vm409_vm11, %v1294_v29, 0.0  ;;  %v4559_v41 = vmax.f32 %v4558_v22, 0.0  ;;  %v4560_v39 = vld [vmem:[#allocation88_spill] sm:$0xff]  ;;  %v4563_v6 = vmax.f32 %v4562_v57, 0.0  ;;  %v4573_v57 = vld [vmem:[#allocation29_spill] sm:$0xff] }
 0x115   :  { %v1562_v13 = vadd.f32 %v1407_v56, %v1292_v38  ;;  %1560 = vadd.xlane.f32.xlu0 %v1559_v30  ;;  %v4561_v18 = vmax.f32 %v4560_v39, 0.0  ;;  %v762_v20 = vsub.f32 0.2, %v563_v45  ;;  %v763_v38 = vsub.f32 0.2, %v568_v16  ;;  %v4568_v30 = vld [vmem:[#allocation89_spill] sm:$0xff] }
 0x116   :  { %v1295_v42 = vadd.f32 %v4559_v41, %v953_v52  ;;  %v1297_v43 = vadd.f32 %v4563_v6, %v955_v26  ;;  %v4564_v29 = vmax.f32 %v3442_v31, 0.0  ;;  %v4566_v0 = vmax.f32 %v4565_v55, 0.0  ;;  %v4571_v39 = vld [vmem:[#allocation158_spill] sm:$0xff]  ;;  %v4575_v31 = vld [vmem:[#allocation165_spill] sm:$0xff]  ;;  %v1747_v55 = vld [vmem:[#allocation2 + $0x2f0] sm:$0xff] }
 0x117   :  { %v1296_v35 = vadd.f32 %v4561_v18, %v954_v53  ;;  %v1564_v56 = vadd.f32 %v1563_v4, %v1562_v13  ;;  %v4567_v52 = vmax.f32 %v3444_v50, 0.0  ;;  %v4569_v23 = vmax.f32 %v4568_v30, 0.0  ;;  %v4576_v4 = vld [vmem:[#allocation172_spill] sm:$0xff]  ;;  %v4578_v30 = vld [vmem:[#allocation173_spill] sm:$0xff] }
 0x118   :  { %v1298_v22 = vadd.f32 %v4566_v0, %v4564_v29  ;;  %v4570_v53 = vmax.f32 %v3448_v11, 0.0  ;;  %v4572_v61 = vmax.f32 %v4571_v39, 0.0  ;;  %vm4574_vm0 = vcmp.eq.s32.totalorder %v4573_v57, %v4501_v12  ;;  %v1746_v0 = vld [vmem:[#allocation2 + $0x2d8] sm:$0xff]  ;;  %v578_v57 = vpop.xlane.xlu1 %577 }
 0x119   :  { %v1299_v41 = vadd.f32 %v4569_v23, %v4567_v52  ;;  %v1410_v26 = vsel %vm4574_vm0, 0.0, %v1296_v35  ;;  %v1568_v45 = vsel %vm409_vm11, %v1297_v43, 0.0  ;;  %v3650_v16 = vadd.f32 %v762_v20, %v4575_v31  ;;  %1565 = vadd.xlane.f32.xlu1 %v1564_v56  ;;  %v4577_v11 = vld [vmem:[#allocation169_spill] sm:$0xff] }
 0x11a   :  { %v1300_v18 = vadd.f32 %v4572_v61, %v4570_v53  ;;  %v3652_v13 = vadd.f32 %v1746_v0, %v762_v20  ;;  %v1567_v50 = vadd.f32 %v1410_v26, %v1295_v42  ;;  %v3655_v6 = vadd.f32 %v762_v20, %v4576_v4  ;;  %v4579_v53 = vld [vmem:[#allocation30_spill] sm:$0xff]  ;;  %v573_v26 = vpop.xlane.xlu0 %572  ;;  %v4588_v39 = vld [vmem:[#allocation161_spill] sm:$0xff] }
 0x11b   :  { %v3658_v29 = vadd.f32 %v763_v38, %v4577_v11  ;;  %v3660_v52 = vadd.f32 %v1747_v55, %v763_v38  ;;  %v3665_v23 = vadd.f32 %v763_v38, %v4578_v30  ;;  %vm4580_vm1 = vcmp.eq.s32.totalorder %v4579_v53, %v4501_v12  ;;  %v4582_v11 = vld [vmem:[#allocation155_spill] sm:$0xff] }
 0x11c   :  { %v1413_v42 = vsel %vm4580_vm1, 0.0, %v1299_v41  ;;  %v1569_v56 = vadd.f32 %v1568_v45, %v1567_v50  ;;  %v1573_v4 = vsel %vm409_vm11, %v1300_v18, 0.0  ;;  %v4581_v38 = vmax.f32 %v3488_v34, 0.0  ;;  %v4585_v45 = vld [vmem:[#allocation90_spill] sm:$0xff] }
 0x11d   :  { %v1572_v0 = vadd.f32 %v1413_v42, %v1298_v22  ;;  %v4583_v55 = vmax.f32 %v4582_v11, 0.0  ;;  %v4584_v41 = vmax.f32 %v3490_v25, 0.0  ;;  %v4586_v50 = vmax.f32 %v4585_v45, 0.0  ;;  %v4591_v42 = vld [vmem:[#allocation156_spill] sm:$0xff]  ;;  %v4594_v11 = vld [vmem:[#allocation91_spill] sm:$0xff]  ;;  %v4597_v45 = vld [vmem:[#allocation166_spill] sm:$0xff] }
 0x11e   :  { %1570 = vadd.xlane.f32.xlu0 %v1569_v56  ;;  %v4587_v61 = vmax.f32 %v3493_v51, 0.0  ;;  %v4589_v20 = vmax.f32 %v4588_v39, 0.0  ;;  %v4590_v22 = vmax.f32 %v3496_v28, 0.0  ;;  %v4592_v18 = vmax.f32 %v4591_v42, 0.0  ;;  %v4599_v39 = vld [vmem:[#allocation31_spill] sm:$0xff] }
 0x11f   :  { %v1301_v30 = vadd.f32 %v4583_v55, %v4581_v38  ;;  %v1302_v53 = vadd.f32 %v4586_v50, %v4584_v41  ;;  %v4593_v34 = vmax.f32 %v3498_v2, 0.0  ;;  %v4595_v38 = vmax.f32 %v4594_v11, 0.0 }
 0x120   :  { %v1303_v43 = vadd.f32 %v4589_v20, %v4587_v61  ;;  %v1304_v31 = vadd.f32 %v4592_v18, %v4590_v22  ;;  %v1574_v55 = vadd.f32 %v1573_v4, %v1572_v0  ;;  %v4596_v25 = vmax.f32 %v3503_v58, 0.0  ;;  %v4601_v61 = vld [vmem:[#allocation32_spill] sm:$0xff]  ;;  %v4603_v0 = vld [vmem:[#allocation162_spill] sm:$0xff] }
 0x121   :  { %v1305_v56 = vadd.f32 %v4595_v38, %v4593_v34  ;;  %v4598_v41 = vmax.f32 %v4597_v45, 0.0  ;;  %v765_v51 = vsub.f32 0.2, %v578_v57  ;;  %v764_v35 = vsub.f32 0.2, %v573_v26  ;;  %v1748_v26 = vld [vmem:[#allocation2 + $0x318] sm:$0xff] }
 0x122   :  { %vm4600_vm2 = vcmp.eq.s32.totalorder %v4599_v39, %v4501_v12  ;;  %v1578_v20 = vsel %vm409_vm11, %v1303_v43, 0.0  ;;  %vm4602_vm3 = vcmp.eq.s32.totalorder %v4601_v61, %v4501_v12  ;;  %v4604_v4 = vmax.f32 %v4603_v0, 0.0  ;;  %1575 = vadd.xlane.f32.xlu1 %v1574_v55  ;;  %v1750_v43 = vld [vmem:[#allocation2 + $0x328] sm:$0xff]  ;;  %v1751_v38 = vld [vmem:[#allocation2 + $0x300] sm:$0xff]  ;;  %v1753_v55 = vld [vmem:[#allocation2 + $0x310] sm:$0xff] }
 0x123   :  { %v1306_v50 = vadd.f32 %v4598_v41, %v4596_v25  ;;  %v1416_v28 = vsel %vm4600_vm2, 0.0, %v1302_v53  ;;  %v1419_v2 = vsel %vm4602_vm3, 0.0, %v1305_v56  ;;  %v3711_v18 = vadd.f32 %v1748_v26, %v765_v51  ;;  %v1749_v53 = vld [vmem:[#allocation2 + $0x320] sm:$0xff]  ;;  %v588_v41 = vpop.xlane.xlu1 %587 }
 0x124   :  { %v1307_v58 = vadd.f32 %v4604_v4, %v965_v14  ;;  %v1577_v22 = vadd.f32 %v1416_v28, %v1301_v30  ;;  %v1582_v42 = vadd.f32 %v1419_v2, %v1304_v31  ;;  %v3713_v34 = vadd.f32 %v1749_v53, %v765_v51  ;;  %v4605_v2 = vld [vmem:[#allocation93_spill] sm:$0xff]  ;;  %v4611_v53 = vld [vmem:[#allocation164_spill] sm:$0xff] }
 0x125   :  { %v1583_v57 = vsel %vm409_vm11, %v1306_v50, 0.0  ;;  %v3715_v11 = vadd.f32 %v1750_v43, %v765_v51  ;;  %v3717_v56 = vadd.f32 %v1751_v38, %v764_v35  ;;  %v3719_v25 = vadd.f32 %v1752_v62, %v764_v35  ;;  %v583_v50 = vpop.xlane.xlu0 %582  ;;  %v4618_v51 = vld [vmem:[#allocation33_spill] sm:$0xff] }
 0x126   :  { %v1579_v14 = vadd.f32 %v1578_v20, %v1577_v22  ;;  %v1584_v30 = vadd.f32 %v1583_v57, %v1582_v42  ;;  %v986_v31 = vmax.f32 %v3711_v18, 0.0  ;;  %v3722_v45 = vadd.f32 %v1753_v55, %v764_v35  ;;  %v4608_v22 = vld [vmem:[#allocation170_spill] sm:$0xff] }
 0x127   :  { %v987_v39 = vmax.f32 %v3713_v34, 0.0  ;;  %v983_v28 = vmax.f32 %v3717_v56, 0.0  ;;  %v984_v61 = vmax.f32 %v3719_v25, 0.0  ;;  %v4606_v0 = vmax.f32 %v4605_v2, 0.0 }
 0x128   :  { %1580 = vadd.xlane.f32.xlu0 %v1579_v14  ;;  %1585 = vadd.xlane.f32.xlu1 %v1584_v30  ;;  %v985_v20 = vmax.f32 %v3722_v45, 0.0  ;;  %v4607_v4 = vmax.f32 %v3547_v46, 0.0  ;;  %v4609_v42 = vmax.f32 %v4608_v22, 0.0  ;;  %v4610_v26 = vmax.f32 %v3550_v40, 0.0  ;;  %v4614_v14 = vld [vmem:[#allocation94_spill] sm:$0xff] }
 0x129   :  { %v1308_v35 = vadd.f32 %v4606_v0, %v966_v60  ;;  %v4612_v43 = vmax.f32 %v4611_v53, 0.0  ;;  %v4613_v62 = vmax.f32 %v3552_v3, 0.0  ;;  %v4615_v30 = vmax.f32 %v4614_v14, 0.0  ;;  %v4623_v53 = vld [vmem:[#allocation34_spill] sm:$0xff]  ;;  %v1758_v14 = vld [vmem:[#allocation2 + $0x338] sm:$0xff] }
 0x12a   :  { %v1309_v57 = vadd.f32 %v4609_v42, %v4607_v4  ;;  %v4616_v21 = vmax.f32 %v3557_v63, 0.0  ;;  %v4617_v2 = vmax.f32 %v2888_v24, 0.0  ;;  %v767_v0 = vsub.f32 0.2, %v588_v41  ;;  %v4621_v42 = vld [vmem:[#allocation95_spill] sm:$0xff] }
 0x12b   :  { %v1310_v38 = vadd.f32 %v4612_v43, %v4610_v26  ;;  %v1311_v55 = vadd.f32 %v4615_v30, %v4613_v62  ;;  %v766_v46 = vsub.f32 0.2, %v583_v50  ;;  %vm4619_vm4 = vcmp.eq.s32.totalorder %v4618_v51, %v4501_v12  ;;  %v1754_v51 = vld [vmem:[#allocation2 + $0x348] sm:$0xff] }
 0x12c   :  { %v1312_v60 = vadd.f32 %v4617_v2, %v4616_v21  ;;  %v1422_v4 = vsel %vm4619_vm4, 0.0, %v1308_v35  ;;  %v1588_v40 = vsel %vm409_vm11, %v1309_v57, 0.0  ;;  %v4620_v3 = vmax.f32 %v2868_v54, 0.0  ;;  %v1756_v54 = vld [vmem:[#allocation2 + $0x358] sm:$0xff] }
 0x12d   :  { %v4622_v63 = vmax.f32 %v4621_v42, 0.0  ;;  %v1587_v24 = vadd.f32 %v1422_v4, %v1307_v58  ;;  %vm4624_vm5 = vcmp.eq.s32.totalorder %v4623_v53, %v4501_v12  ;;  %v3765_v35 = vadd.f32 %v1754_v51, %v767_v0  ;;  %v602_v4 = vpop.xlane.xlu1 %601  ;;  %v4627_v53 = vld [vmem:[#allocation35_spill] sm:$0xff] }
 0x12e   :  { %v1313_v22 = vadd.f32 %v4620_v3, %v971_v5  ;;  %v1425_v41 = vsel %vm4624_vm5, 0.0, %v1311_v55  ;;  %v1593_v50 = vsel %vm409_vm11, %v1312_v60, 0.0  ;;  %v3767_v43 = vadd.f32 %v1755_v27, %v767_v0  ;;  %v1759_v55 = vld [vmem:[#allocation2 + $0x340] sm:$0xff]  ;;  %v593_v3 = vpop.xlane.xlu0 %592 }
 0x12f   :  { %v1314_v26 = vadd.f32 %v4622_v63, %v972_v1  ;;  %v1592_v57 = vadd.f32 %v1425_v41, %v1310_v38  ;;  %v3769_v5 = vadd.f32 %v1756_v54, %v767_v0  ;;  %v3771_v62 = vadd.f32 %v1757_v19, %v766_v46  ;;  %v4625_v63 = vld [vmem:[#allocation174_spill] sm:$0xff] }
 0x130   :  { %v1589_v1 = vadd.f32 %v1588_v40, %v1587_v24  ;;  %v992_v58 = vmax.f32 %v3765_v35, 0.0  ;;  %v3774_v30 = vadd.f32 %v1758_v14, %v766_v46  ;;  %v3776_v21 = vadd.f32 %v1759_v55, %v766_v46 }
 0x131   :  { %v1594_v2 = vadd.f32 %v1593_v50, %v1592_v57  ;;  %v993_v38 = vmax.f32 %v3767_v43, 0.0  ;;  %v994_v60 = vmax.f32 %v3769_v5, 0.0  ;;  %v989_v0 = vmax.f32 %v3771_v62, 0.0  ;;  %v4630_v57 = vld [vmem:[#allocation171_spill] sm:$0xff] }
 0x132   :  { %1590 = vadd.xlane.f32.xlu0 %v1589_v1  ;;  %v990_v40 = vmax.f32 %v3774_v30, 0.0  ;;  %v991_v42 = vmax.f32 %v3776_v21, 0.0  ;;  %v4626_v24 = vmax.f32 %v4625_v63, 0.0  ;;  %vm4628_vm6 = vcmp.eq.s32.totalorder %v4627_v53, %v4501_v12  ;;  %v4633_v1 = vld [vmem:[#allocation96_spill] sm:$0xff]  ;;  %v4636_v63 = vld [vmem:[#allocation175_spill] sm:$0xff] }
 0x133   :  { %v1428_v41 = vsel %vm4628_vm6, 0.0, %v1314_v26  ;;  %1595 = vadd.xlane.f32.xlu1 %v1594_v2  ;;  %v4629_v51 = vmax.f32 %v3604_v33, 0.0  ;;  %v4631_v27 = vmax.f32 %v4630_v57, 0.0  ;;  %v4632_v19 = vmax.f32 %v3606_v47, 0.0  ;;  %v4677_v30 = vld [vmem:[#allocation179_spill] sm:$0xff]  ;;  %v4679_v21 = vld [vmem:[#allocation60_spill] sm:$0xff] }
 0x134   :  { %v1315_v46 = vadd.f32 %v4626_v24, %v973_v9  ;;  %v1597_v50 = vadd.f32 %v1428_v41, %v1313_v22  ;;  %v4634_v14 = vmax.f32 %v4633_v1, 0.0  ;;  %v4635_v37 = vmax.f32 %v3611_v15, 0.0 }
 0x135   :  { %v1316_v54 = vadd.f32 %v4631_v27, %v4629_v51  ;;  %v4637_v9 = vmax.f32 %v4636_v63, 0.0  ;;  %v769_v26 = vsub.f32 0.2, %v602_v4  ;;  %v768_v2 = vsub.f32 0.2, %v593_v3  ;;  %v1763_v63 = vld [vmem:[#allocation2 + $0x360] sm:$0xff] }
 0x136   :  { %v1317_v55 = vadd.f32 %v4634_v14, %v4632_v19  ;;  %v1598_v53 = vsel %vm409_vm11, %v1315_v46, 0.0  ;;  %v4638_v22 = vmax.f32 %v3650_v16, 0.0  ;;  %v4639_v33 = vmax.f32 %v2880_v17, 0.0  ;;  %v4642_v19 = vld [vmem:[#allocation97_spill] sm:$0xff]  ;;  %v1762_v17 = vld [vmem:[#allocation2 + $0x388] sm:$0xf] }
 0x137   :  { %v1318_v24 = vadd.f32 %v4637_v9, %v4635_v37  ;;  %v1599_v51 = vadd.f32 %v1598_v53, %v1597_v50  ;;  %v4641_v15 = vmax.f32 %v3652_v13, 0.0  ;;  %v4643_v1 = vmax.f32 %v4642_v19, 0.0  ;;  %v1760_v4 = vld [vmem:[#allocation2 + $0x378] sm:$0xf]  ;;  %v1761_v16 = vld [vmem:[#allocation2 + $0x380] sm:$0xf] }
 0x138   :  { %v1319_v41 = vadd.f32 %v4639_v33, %v4638_v22  ;;  %v1431_v47 = vsel %vm268_vm13, 0.0, %v1317_v55  ;;  %v3815_v3 = vadd.f32 %v1760_v4, %v769_v26  ;;  %v3817_v37 = vadd.f32 %v1761_v16, %v769_v26  ;;  %v1764_v9 = vld [vmem:[#allocation2 + $0x368] sm:$0xff]  ;;  %v1765_v53 = vld [vmem:[#allocation2 + $0x370] sm:$0xff] }
 0x139   :  { %v1603_v27 = vsel %vm409_vm11, %v1318_v24, 0.0  ;;  %v1320_v14 = vadd.f32 %v4643_v1, %v4641_v15  ;;  %v1602_v46 = vadd.f32 %v1431_v47, %v1316_v54  ;;  %v3819_v50 = vadd.f32 %v1762_v17, %v769_v26  ;;  %1600 = vadd.xlane.f32.xlu0 %v1599_v51  ;;  %v4646_v4 = vld [vmem:[#allocation40_spill] sm:$0xff] }
 0x13a   :  { %v881_v55 = vadd.f32 %v1763_v63, %v768_v2  ;;  %v882_v24 = vadd.f32 %v1764_v9, %v768_v2  ;;  %v883_v13 = vadd.f32 %v1765_v53, %v768_v2  ;;  %v4644_v22 = vmax.f32 %v3655_v6, 0.0 }
 0x13b   :  { %v4645_v54 = vmax.f32 %v2917_v8, 0.0  ;;  %v1604_v57 = vadd.f32 %v1603_v27, %v1602_v46  ;;  %v998_v47 = vmax.f32 %v3815_v3, 0.0  ;;  %v999_v15 = vmax.f32 %v3817_v37, 0.0  ;;  %v4651_v37 = vld [vmem:[#allocation98_spill] sm:$0xff] }
 0x13c   :  { %v1000_v26 = vmax.f32 %v3819_v50, 0.0  ;;  %v995_v19 = vmax.f32 %v881_v55, 0.0  ;;  %v996_v51 = vmax.f32 %v882_v24, 0.0  ;;  %v997_v1 = vmax.f32 %v883_v13, 0.0  ;;  %v4654_v55 = vld [vmem:[#allocation176_spill] sm:$0xff] }
 0x13d   :  { %v1321_v33 = vadd.f32 %v4645_v54, %v4644_v22  ;;  %vm4647_vm13 = vcmp.eq.s32.totalorder %v4646_v4, %v4501_v12  ;;  %1605 = vadd.xlane.f32.xlu1 %v1604_v57  ;;  %v4648_v8 = vmax.f32 %v3658_v29, 0.0  ;;  %v4649_v27 = vmax.f32 %v2892_v10, 0.0 }
 0x13e   :  { %v1434_v16 = vsel %vm4647_vm13, 0.0, %v1320_v14  ;;  %v4650_v3 = vmax.f32 %v3660_v52, 0.0  ;;  %v4652_v17 = vmax.f32 %v4651_v37, 0.0  ;;  %v4653_v63 = vmax.f32 %v3665_v23, 0.0  ;;  %v4658_v52 = vld [vmem:[#allocation59_spill] sm:$0xff] }
 0x13f   :  { %v1607_v2 = vadd.f32 %v1434_v16, %v1319_v41  ;;  %v1608_v6 = vsel %vm409_vm11, %v1321_v33, 0.0  ;;  %v1322_v46 = vadd.f32 %v4649_v27, %v4648_v8  ;;  %v4655_v9 = vmax.f32 %v4654_v55, 0.0  ;;  %v4660_v23 = vld [vmem:[#allocation43_spill] sm:$0xff]  ;;  %v4672_v27 = vld [vmem:[#allocation61_spill] sm:$0xff] }
 0x140   :  { %v1323_v50 = vadd.f32 %v4652_v17, %v4650_v3  ;;  %v4656_v41 = vmax.f32 %v2913_v44, 0.0  ;;  %v4657_v10 = vmax.f32 %v2924_v59, 0.0  ;;  %v4659_v53 = vmax.f32 %v4658_v52, 0.0  ;;  %v4674_v3 = vld [vmem:[#allocation38_spill] sm:$0xff] }
 0x141   :  { %v1324_v24 = vadd.f32 %v4655_v9, %v4653_v63  ;;  %v1609_v22 = vadd.f32 %v1608_v6, %v1607_v2  ;;  %vm4661_vm7 = vcmp.eq.s32.totalorder %v4660_v23, %v4501_v12  ;;  %v4662_v44 = vmax.f32 %v2910_v7, 0.0  ;;  %v4668_v7 = vld [vmem:[#allocation58_spill] sm:$0xff] }
 0x142   :  { %v1325_v14 = vadd.f32 %v4656_v41, %v983_v28  ;;  %v1326_v29 = vadd.f32 %v4657_v10, %v984_v61  ;;  %v1327_v13 = vadd.f32 %v4659_v53, %v985_v20  ;;  %v1437_v54 = vsel %vm4661_vm7, 0.0, %v1323_v50  ;;  %v4664_v61 = vld [vmem:[#allocation37_spill] sm:$0xff]  ;;  %v4665_v20 = vld [vmem:[#allocation39_spill] sm:$0xff]  ;;  %v4686_v41 = vld [vmem:[#allocation180_spill] sm:$0xff] }
 0x143   :  { %v1328_v56 = vadd.f32 %v4662_v44, %v986_v31  ;;  %v4663_v59 = vmax.f32 %v2904_v48, 0.0  ;;  %v1612_v28 = vadd.f32 %v1437_v54, %v1322_v46  ;;  %v1613_v45 = vsel %vm409_vm11, %v1324_v24, 0.0  ;;  %1610 = vadd.xlane.f32.xlu0 %v1609_v22  ;;  %v4681_v50 = vld [vmem:[#allocation41_spill] sm:$0xff] }
 0x144   :  { %vm4666_vm8 = vcmp.eq.s32.totalorder %v4664_v61, %v4665_v20  ;;  %v1617_v57 = vadd.f32 %v1326_v29, %v1325_v14  ;;  %v4667_v18 = vmax.f32 %v3715_v11, 0.0  ;;  %v4669_v31 = vmax.f32 %v4668_v7, 0.0  ;;  %v4687_v29 = vld [vmem:[#allocation63_spill] sm:$0xff] }
 0x145   :  { %v1329_v25 = vadd.f32 %v4663_v59, %v987_v39  ;;  %v1441_v33 = vsel %vm4666_vm8, 0.0, %v1327_v13  ;;  %v4670_v48 = vmax.f32 %v2947_v32, 0.0  ;;  %v1614_v16 = vadd.f32 %v1613_v45, %v1612_v28  ;;  %v4689_v13 = vld [vmem:[#allocation178_spill] sm:$0xff] }
 0x146   :  { %v1618_v12 = vsel %vm409_vm11, %v1441_v33, 0.0  ;;  %v1330_v4 = vadd.f32 %v4669_v31, %v4667_v18  ;;  %v4671_v6 = vmax.f32 %v2944_v49, 0.0  ;;  %v4673_v11 = vmax.f32 %v4672_v27, 0.0  ;;  %v4693_v28 = vld [vmem:[#allocation62_spill] sm:$0xff] }
 0x147   :  { %v1622_v34 = vadd.f32 %v1329_v25, %v1328_v56  ;;  %v1331_v39 = vadd.f32 %v4670_v48, %v989_v0  ;;  %v1619_v2 = vadd.f32 %v1618_v12, %v1617_v57  ;;  %vm4675_vm9 = vcmp.eq.s32.totalorder %v4674_v3, %v4665_v20  ;;  %1615 = vadd.xlane.f32.xlu1 %v1614_v16  ;;  %v4691_v56 = vld [vmem:[#allocation177_spill] sm:$0xff] }
 0x148   :  { %v1332_v8 = vadd.f32 %v4671_v6, %v990_v40  ;;  %v1333_v46 = vadd.f32 %v4673_v11, %v991_v42  ;;  %v1444_v37 = vsel %vm4675_vm9, 0.0, %v1330_v4  ;;  %v4676_v32 = vmax.f32 %v2941_v36, 0.0  ;;  %v4683_v36 = vld [vmem:[#allocation181_spill] sm:$0xff]  ;;  %v1461_v4 = vpop.xlane.xlu0 %1460 }
 0x149   :  { %v4678_v0 = vmax.f32 %v4677_v30, 0.0  ;;  %v4680_v40 = vmax.f32 %v4679_v21, 0.0  ;;  %v1623_v42 = vsel %vm409_vm11, %v1444_v37, 0.0  ;;  %vm4682_vm10 = vcmp.eq.s32.totalorder %v4681_v50, %v4665_v20  ;;  %1620 = vadd.xlane.f32.xlu0 %v1619_v2 }
 0x14a   :  { %v1334_v62 = vadd.f32 %v4676_v32, %v992_v58  ;;  %v1447_v35 = vsel %vm4682_vm10, 0.0, %v1333_v46  ;;  %v1627_v63 = vadd.f32 %v1332_v8, %v1331_v39  ;;  %v1223_v58 = vmax.f32 %v4683_v36, 0.0 }
 0x14b   :  { %v1335_v49 = vadd.f32 %v4678_v0, %v993_v38  ;;  %v1336_v17 = vadd.f32 %v4680_v40, %v994_v60  ;;  %v1624_v43 = vadd.f32 %v1623_v42, %v1622_v34  ;;  %v1628_v55 = vsel %vm409_vm11, %v1447_v35, 0.0  ;;  %v4684_v38 = vld [vmem:[#allocation42_spill] sm:$0xff] }
 0x14c   :  { %vm4685_vm0 = vcmp.eq.s32.totalorder %v4684_v38, %v4665_v20  ;;  %v1629_v60 = vadd.f32 %v1628_v55, %v1627_v63  ;;  %v1224_v14 = vmax.f32 %v4686_v41, 0.0  ;;  %v1337_v10 = vadd.f32 %v1223_v58, %v995_v19 }
 0x14d   :  { %v1450_v5 = vsel %vm4685_vm0, 0.0, %v1336_v17  ;;  %v1632_v9 = vadd.f32 %v1335_v49, %v1334_v62  ;;  %v4688_v52 = vmax.f32 %v4687_v29, 0.0  ;;  %vm594_vm1 = vcmask 1043456   ;;  %1625 = vadd.xlane.f32.xlu1 %v1624_v43  ;;  %v1466_v34 = vpop.xlane.xlu1 %1465 }
 0x14e   :  { %v1633_v24 = vsel %vm409_vm11, %v1450_v5, 0.0  ;;  %v4690_v22 = vmax.f32 %v4689_v13, 0.0  ;;  %v1338_v44 = vadd.f32 %v1224_v14, %v996_v51  ;;  %v4692_v59 = vmax.f32 %v4691_v56, 0.0  ;;  %1630 = vadd.xlane.f32.xlu0 %v1629_v60 }
 0x14f   :  { %v1339_v53 = vadd.f32 %v4688_v52, %v997_v1  ;;  %v1634_v54 = vadd.f32 %v1633_v24, %v1632_v9  ;;  %v4694_v45 = vmax.f32 %v4693_v28, 0.0  ;;  %v1649_v48 = vadd.f32 %v1466_v34, %v1461_v4 }
 0x150   :  { %v1340_v23 = vadd.f32 %v4690_v22, %v998_v47  ;;  %v1341_v25 = vadd.f32 %v4692_v59, %v999_v15  ;;  %v1637_v57 = vadd.f32 %v1338_v44, %v1337_v10 }
 0x151   :  { %v1342_v61 = vadd.f32 %v4694_v45, %v1000_v26  ;;  %v1453_v19 = vsel %vm290_vm15, 0.0, %v1339_v53  ;;  %1635 = vadd.xlane.f32.xlu1 %v1634_v54 }
 0x152   :  { %v1642_v1 = vsel %vm594_vm1, %v1340_v23, 0.0  ;;  %v1638_v12 = vsel %vm409_vm11, %v1453_v19, 0.0  ;;  %v1643_v18 = vsel %vm594_vm1, %v1341_v25, 0.0  ;;  %v1471_v39 = vpop.xlane.xlu0 %1470  ;;  %vm1695_vm11 = vcmask 0  }
 0x153   :  { %v1456_v51 = vsel %vm293_vm14, 0.0, %v1342_v61  ;;  %v1644_v15 = vadd.f32 %v1643_v18, %v1642_v1  ;;  %v1639_v26 = vadd.f32 %v1638_v12, %v1637_v57  ;;  %v1650_v16 = vadd.f32 %v1649_v48, %v1471_v39 }
 0x154   :  { %v1645_v7 = vsel %vm598_vm12, %v1456_v51, 0.0 }
 0x155   :  { %v1646_v31 = vadd.f32 %v1645_v7, %v1644_v15  ;;  %1640 = vadd.xlane.f32.xlu0 %v1639_v26 }
 0x156   :  { %v1476_v2 = vpop.xlane.xlu1 %1475 }
 0x157   :  { %1647 = vadd.xlane.f32.xlu1 %v1646_v31  ;;  %v1651_v6 = vadd.f32 %v1650_v16, %v1476_v2 }
 0x15a   :  { %v1481_v8 = vpop.xlane.xlu0 %1480 }
 0x15b   :  { %v1652_v20 = vadd.f32 %v1651_v6, %v1481_v8 }
 0x160   :  { %v1486_v27 = vpop.xlane.xlu1 %1485 }
 0x161   :  { %v1653_v11 = vadd.f32 %v1652_v20, %v1486_v27 }
 0x163   :  { %v1491_v46 = vpop.xlane.xlu0 %1490 }
 0x164   :  { %v1654_v3 = vadd.f32 %v1653_v11, %v1491_v46 }
 0x167   :  { %v1496_v37 = vpop.xlane.xlu1 %1495 }
 0x168   :  { %v1655_v32 = vadd.f32 %v1654_v3, %v1496_v37 }
 0x16c   :  { %v1501_v62 = vpop.xlane.xlu0 %1500 }
 0x16d   :  { %v1656_v30 = vadd.f32 %v1655_v32, %v1501_v62 }
 0x172   :  { %v1506_v0 = vpop.xlane.xlu1 %1505 }
 0x173   :  { %v1657_v49 = vadd.f32 %v1656_v30, %v1506_v0 }
 0x174   :  { %v1511_v21 = vpop.xlane.xlu0 %1510 }
 0x175   :  { %v1658_v40 = vadd.f32 %v1657_v49, %v1511_v21 }
 0x179   :  { %v1516_v17 = vpop.xlane.xlu1 %1515 }
 0x17a   :  { %v1659_v42 = vadd.f32 %v1658_v40, %v1516_v17 }
 0x17d   :  { %v1521_v50 = vpop.xlane.xlu0 %1520 }
 0x17e   :  { %v1660_v35 = vadd.f32 %v1659_v42, %v1521_v50 }
 0x183   :  { %v1526_v63 = vpop.xlane.xlu1 %1525 }
 0x184   :  { %v1661_v36 = vadd.f32 %v1660_v35, %v1526_v63 }
 0x187   :  { %v1531_v58 = vpop.xlane.xlu0 %1530 }
 0x188   :  { %v1662_v43 = vadd.f32 %v1661_v36, %v1531_v58 }
 0x18a   :  { %v1536_v55 = vpop.xlane.xlu1 %1535 }
 0x18b   :  { %v1663_v38 = vadd.f32 %v1662_v43, %v1536_v55 }
 0x190   :  { %v1541_v5 = vpop.xlane.xlu0 %1540 }
 0x191   :  { %v1664_v9 = vadd.f32 %v1663_v38, %v1541_v5 }
 0x194   :  { %v1546_v60 = vpop.xlane.xlu1 %1545 }
 0x195   :  { %v1665_v24 = vadd.f32 %v1664_v9, %v1546_v60 }
 0x199   :  { %v1551_v41 = vpop.xlane.xlu0 %1550 }
 0x19a   :  { %v1666_v14 = vadd.f32 %v1665_v24, %v1551_v41 }
 0x19d   :  { %v1556_v10 = vpop.xlane.xlu1 %1555 }
 0x19e   :  { %v1667_v29 = vadd.f32 %v1666_v14, %v1556_v10 }
 0x1a2   :  { %v1561_v52 = vpop.xlane.xlu0 %1560 }
 0x1a3   :  { %v1668_v53 = vadd.f32 %v1667_v29, %v1561_v52 }
 0x1a6   :  { %v1566_v13 = vpop.xlane.xlu1 %1565 }
 0x1a7   :  { %v1669_v22 = vadd.f32 %v1668_v53, %v1566_v13 }
 0x1ab   :  { %v1571_v23 = vpop.xlane.xlu0 %1570 }
 0x1ac   :  { %v1670_v54 = vadd.f32 %v1669_v22, %v1571_v23 }
 0x1af   :  { %v1576_v44 = vpop.xlane.xlu1 %1575 }
 0x1b0   :  { %v1671_v56 = vadd.f32 %v1670_v54, %v1576_v44 }
 0x1b5   :  { %v1581_v59 = vpop.xlane.xlu0 %1580  ;;  %v1586_v28 = vpop.xlane.xlu1 %1585 }
 0x1b6   :  { %v1672_v25 = vadd.f32 %v1671_v56, %v1581_v59 }
 0x1b8   :  { %v1673_v45 = vadd.f32 %v1672_v25, %v1586_v28 }
 0x1bf   :  { %v1591_v61 = vpop.xlane.xlu0 %1590 }
 0x1c0   :  { %v1674_v33 = vadd.f32 %v1673_v45, %v1591_v61  ;;  %v1596_v19 = vpop.xlane.xlu1 %1595 }
 0x1c2   :  { %v1675_v1 = vadd.f32 %v1674_v33, %v1596_v19 }
 0x1c6   :  { %v1601_v57 = vpop.xlane.xlu0 %1600 }
 0x1c7   :  { %v1676_v12 = vadd.f32 %v1675_v1, %v1601_v57 }
 0x1ca   :  { %v1606_v47 = vpop.xlane.xlu1 %1605 }
 0x1cb   :  { %v1677_v51 = vadd.f32 %v1676_v12, %v1606_v47 }
 0x1d0   :  { %v1611_v18 = vpop.xlane.xlu0 %1610 }
 0x1d1   :  { %v1678_v15 = vadd.f32 %v1677_v51, %v1611_v18 }
 0x1d4   :  { %v1616_v7 = vpop.xlane.xlu1 %1615 }
 0x1d5   :  { %v1679_v26 = vadd.f32 %v1678_v15, %v1616_v7 }
 0x1d6   :  { %v1621_v31 = vpop.xlane.xlu0 %1620 }
 0x1d7   :  { %v1680_v4 = vadd.f32 %v1679_v26, %v1621_v31 }
 0x1da   :  { %v1626_v34 = vpop.xlane.xlu1 %1625 }
 0x1db   :  { %v1681_v48 = vadd.f32 %v1680_v4, %v1626_v34  ;;  %v1631_v39 = vpop.xlane.xlu0 %1630 }
 0x1dd   :  { %v1682_v16 = vadd.f32 %v1681_v48, %v1631_v39 }
 0x1de   :  { %v1636_v2 = vpop.xlane.xlu1 %1635 }
 0x1df   :  { %v1683_v6 = vadd.f32 %v1682_v16, %v1636_v2 }
 0x1e2   :  { %v1641_v8 = vpop.xlane.xlu0 %1640 }
 0x1e3   :  { %v1684_v20 = vadd.f32 %v1683_v6, %v1641_v8 }
 0x1e4   :  { %v1648_v27 = vpop.xlane.xlu1 %1647 }
 0x1e5   :  { %v1685_v11 = vsel %vm594_vm1, %v1648_v27, 0.0 }
 0x1e6   :  { %v1686_v46 = vadd.f32 %v1685_v11, %v1684_v20 }
 0x1e8   :  { %v1687_v3 = vrot.slane %v1686_v46, 4 }
 0x1ea   :  { %v1688_v37 = vadd.f32 %v1687_v3, %v1686_v46 }
 0x1ec   :  { %v1689_v32 = vrot.slane %v1688_v37, 2 }
 0x1ee   :  { %v1690_v62 = vadd.f32 %v1689_v32, %v1688_v37 }
 0x1f0   :  { %v1691_v30 = vrot.slane %v1690_v62, 1 }
 0x1f2   :  { %v1692_v0 = vadd.f32 %v1691_v30, %v1690_v62 }
 0x1f4   :  { %v1694_v49 = vmul.f32 5.574136e-06, %v1692_v0 }
 0x1f6   :  { %1696 = vst.msk [vmem:[#allocation5] sm:$0x1] %vm1695_vm11, %v1694_v49 }
 0x1f7   :  { %1799 = shalt.err (!%p1796_p12)
}
 0x1f8   :  { %s1800_s25 = scalar_lea.hbm %s3946_s1, 16 }
 0x1f9   :  { %p1801_p13 = scmp.ne.s32.totalorder %s3946_s1, %s1800_s25  ;;  %p1804_p0 = scmp.lt.u32.totalorder %s1800_s25, %s3946_s1 }
 0x1fb   :  { %p1806_p1 = pnand %p1804_p0, %p1801_p13 }
 0x1fd   :  { %1809 = shalt.err (!%p1806_p1)
}
 0x1fe   :  { %1706 = dma.vmem_to_hbm [thread:$0]  %s1704_s20, 16, %s3946_s1, [#allocation4]  }
 0x1ff   :  { %1812 = dma.done.wait [#allocation4], 16  }
 0x200   :  { %1813 = vsyncadd [#allocation4], 4294967280 }
 0x201   :  { %1710 = vsyncpa [#allocation3], 1 }
 0x202   :  { %1711 = vsyncpa [#allocation4], 1 }

</bundles_post_ra>
